<compile_context>
chip_gen: v7x
topology: tpu7x:2x2x1
jax: 0.10.0
libtpu: 0.0.40
codegen_flags: <defaults>
</compile_context>

<pallas_src>
import jax
import jax.numpy as jnp
from jax import lax
from jax.experimental import pallas as pl
from jax.experimental.pallas import tpu as pltpu

_PAD = 8  # sublane padding at both ends of the flattened scratch buffers


def _fold_params(w, b, gamma, beta, mean, var, eps=1e-5):
    """Fold conv bias + eval-mode BatchNorm into conv weights / per-channel bias.

    Returns (w_taps, bias): w_taps (9, Cin, Cout) bf16 with BN scale folded in,
    bias (1, Cout) f32, so that  conv(x, w_taps) + bias == BN(conv(x, w) + b).
    """
    o, i = w.shape[0], w.shape[1]
    scale = gamma / jnp.sqrt(var + eps)                          # (O,)
    w_taps = jnp.transpose(w, (2, 3, 1, 0)).reshape(9, i, o)     # (9, I, O), k = 3*dy + dx
    w_taps = (w_taps * scale[None, None, :]).astype(jnp.bfloat16)
    bias = ((b - mean) * scale + beta).reshape(1, o).astype(jnp.float32)
    return w_taps, bias


def _pick_row_tile(hp, wp):
    """Row tile TH: divides Hp, keeps TH*Wp a multiple of 8 and bounded (~<=1024 rows)."""
    if hp * wp <= 1024:
        return hp
    best = hp
    for th in range(1, hp + 1):
        if hp % th == 0 and (th * wp) % 8 == 0 and th * wp <= 1024:
            best = th
    return best


def down_forward(x_nchw, params, row_tile=None):
    """Down.forward.  x_nchw: (N, Cin, H, W) f32 -> (N, Cout, H//2, W//2) f32."""
    (w1, b1, g1, be1, m1, v1, w2, b2, g2, be2, m2, v2) = params
    N, Cin, H, W = x_nchw.shape
    Cout = w1.shape[0]
    Hp, Wp = H // 2, W // 2                      # MaxPool2d(2) floors odd sizes

    # Layout-only glue (no duplicated HBM traffic): NCHW -> NHWC, bf16, crop to even
    # spatial size, then a *free* contiguous reshape exposing the 2x2 pool structure.
    x = jnp.transpose(x_nchw, (0, 2, 3, 1)).astype(jnp.bfloat16)
    x = x[:, :2 * Hp, :2 * Wp, :].reshape(N, Hp, 2, Wp, 2 * Cin)

    w1k, bias1 = _fold_params(w1, b1, g1, be1, m1, v1)   # (9, Cin,  Cout) bf16, (1, Cout) f32
    w2k, bias2 = _fold_params(w2, b2, g2, be2, m2, v2)   # (9, Cout, Cout) bf16, (1, Cout) f32

    TH = _pick_row_tile(Hp, Wp) if row_tile is None else int(row_tile)
    assert Hp % TH == 0 and (TH == Hp or (TH * Wp) % 8 == 0), (TH, Hp, Wp)
    n_rows = Hp // TH
    M1 = (TH + 2) * Wp        # conv1 computes 1 redundant halo row per side for conv2
    M2 = TH * Wp
    PAD = _PAD
    # TODO(synk): for lane-dense stores on tiny channel counts (Cout < 128) the caller
    # could pad channels to 128; real UNet stages (>=64/128 ch) are already lane-friendly.

    def kernel(x_ref, t0_ref, t1_ref, bt0_ref, bt1_ref,
               w1_ref, bias1_ref, w2_ref, bias2_ref,
               out_ref, pool_ref, h1_ref):
        i = pl.program_id(1)
        r0 = i * TH

        # ---------------- MaxPool2d(2), in-kernel ----------------
        def pool_pair(even_rows, odd_rows):
            rmax = jnp.maximum(even_rows, odd_rows)                  # (..., Wp, 2*Cin)
            return jnp.maximum(rmax[..., :Cin], rmax[..., Cin:])     # (..., Wp, Cin)

        pooled = pool_pair(x_ref[0, :, 0, :, :], x_ref[0, :, 1, :, :])   # (TH, Wp, Cin)

        def pool_halo(ref, valid):
            row = pool_pair(ref[0, 0, 0, :, :], ref[0, 0, 1, :, :])      # (Wp, Cin)
            # out-of-image pooled rows are exactly the conv's zero padding
            return jnp.where(valid, row, 0)

        zci = jnp.zeros((PAD, Cin), pool_ref.dtype)
        pool_ref[0:PAD, :] = zci
        pool_ref[PAD + (TH + 4) * Wp:PAD + (TH + 4) * Wp + PAD, :] = zci
        pool_ref[PAD + 0 * Wp:PAD + 1 * Wp, :] = pool_halo(t0_ref, r0 - 2 >= 0)
        pool_ref[PAD + 1 * Wp:PAD + 2 * Wp, :] = pool_halo(t1_ref, r0 - 1 >= 0)
        pool_ref[PAD + (TH + 2) * Wp:PAD + (TH + 3) * Wp, :] = pool_halo(bt0_ref, r0 + TH < Hp)
        pool_ref[PAD + (TH + 3) * Wp:PAD + (TH + 4) * Wp, :] = pool_halo(bt1_ref, r0 + TH + 1 < Hp)
        pool_ref[PAD + 2 * Wp:PAD + (TH + 2) * Wp, :] = pooled.reshape(TH * Wp, Cin)

        # ------------- 3x3 "same" conv = 9 shifted matmuls on a flat (rows*Wp, C) buffer.
        # H-offsets are aligned slices; W-offsets are masked +/-1 shifted reads (no reshapes).
        def conv3x3(src_ref, w_ref, m_rows):
            col = lax.broadcasted_iota(jnp.int32, (m_rows, 1), 0) % Wp
            not_first = col != 0
            not_last = col != (Wp - 1)
            acc = jnp.zeros((m_rows, w_ref.shape[-1]), jnp.float32)
            for k in range(9):
                dy, dx = k // 3, k % 3
                start = PAD + dy * Wp + (dx - 1)
                opnd = src_ref[start:start + m_rows, :]
                if dx == 0:
                    opnd = jnp.where(not_first, opnd, 0)
                elif dx == 2:
                    opnd = jnp.where(not_last, opnd, 0)
                acc = acc + jnp.dot(opnd, w_ref[k], preferred_element_type=jnp.float32)
            return acc

        # conv1 + folded BN + ReLU over TH+2 rows (redundant halo row per side for conv2)
        h1 = jnp.maximum(conv3x3(pool_ref, w1_ref, M1) + bias1_ref[...], 0.0)
        # h1 rows that fall outside the image act as conv2's zero padding
        rows = lax.broadcasted_iota(jnp.int32, (M1, 1), 0)
        pad_top = jnp.logical_and(i == 0, rows < Wp)
        pad_bot = jnp.logical_and(i == pl.num_programs(1) - 1, rows >= (TH + 1) * Wp)
        h1 = jnp.where(jnp.logical_or(pad_top, pad_bot), 0.0, h1)

        zco = jnp.zeros((PAD, Cout), h1_ref.dtype)
        h1_ref[0:PAD, :] = zco
        h1_ref[PAD + M1:PAD + M1 + PAD, :] = zco
        h1_ref[PAD:PAD + M1, :] = h1.astype(h1_ref.dtype)

        # conv2 + folded BN + ReLU -> this tile's output rows
        out = jnp.maximum(conv3x3(h1_ref, w2_ref, M2) + bias2_ref[...], 0.0)
        out_ref[0] = out.astype(out_ref.dtype)

    def _halo_spec(idx_fn):
        return pl.BlockSpec((1, 1, 2, Wp, 2 * Cin),
                            lambda n, i: (n, idx_fn(i), 0, 0, 0))

    in_specs = [
        pl.BlockSpec((1, TH, 2, Wp, 2 * Cin), lambda n, i: (n, i, 0, 0, 0)),
        _halo_spec(lambda i: jnp.maximum(i * TH - 2, 0)),          # pooled row r0-2
        _halo_spec(lambda i: jnp.maximum(i * TH - 1, 0)),          # pooled row r0-1
        _halo_spec(lambda i: jnp.minimum(i * TH + TH, Hp - 1)),    # pooled row r0+TH
        _halo_spec(lambda i: jnp.minimum(i * TH + TH + 1, Hp - 1)),
        pl.BlockSpec((9, Cin, Cout), lambda n, i: (0, 0, 0)),
        pl.BlockSpec((1, Cout), lambda n, i: (0, 0)),
        pl.BlockSpec((9, Cout, Cout), lambda n, i: (0, 0, 0)),
        pl.BlockSpec((1, Cout), lambda n, i: (0, 0)),
    ]
    out_spec = pl.BlockSpec((1, TH * Wp, Cout), lambda n, i: (n, i, 0))

    out_flat = pl.pallas_call(
        kernel,
        out_shape=jax.ShapeDtypeStruct((N, Hp * Wp, Cout), jnp.float32),
        grid_spec=pltpu.PrefetchScalarGridSpec(
            num_scalar_prefetch=0,
            grid=(N, n_rows),
            in_specs=in_specs,
            out_specs=out_spec,
            scratch_shapes=[
                pltpu.VMEM((2 * PAD + (TH + 4) * Wp, Cin), jnp.bfloat16),   # pooled tile (+halo)
                pltpu.VMEM((2 * PAD + (TH + 2) * Wp, Cout), jnp.bfloat16),  # conv1 activation
            ],
        ),
        compiler_params=pltpu.CompilerParams(
            dimension_semantics=("parallel", "parallel"),
            vmem_limit_bytes=32 * 1024 * 1024,
        ),
    )(x, x, x, x, x, w1k, bias1, w2k, bias2)

    out = out_flat.reshape(N, Hp, Wp, Cout)
    return jnp.transpose(out, (0, 3, 1, 2)).astype(x_nchw.dtype)   # back to NCHW


def down_reference(x, params, eps=1e-5):
    """Pure-JAX (XLA) reference matching the PyTorch semantics, NCHW, f32."""
    w1, b1, g1, be1, m1, v1, w2, b2, g2, be2, m2, v2 = params
    pooled = lax.reduce_window(x, -jnp.inf, lax.max, (1, 1, 2, 2), (1, 1, 2, 2), "VALID")

    def block(h, w, b, gamma, beta, mean, var):
        y = lax.conv_general_dilated(h, w, (1, 1), "SAME",
                                     dimension_numbers=("NCHW", "OIHW", "NCHW"))
        y = y + b[None, :, None, None]
        scale = (gamma / jnp.sqrt(var + eps))[None, :, None, None]
        y = (y - mean[None, :, None, None]) * scale + beta[None, :, None, None]
        return jnp.maximum(y, 0.0)

    h = block(pooled, w1, b1, g1, be1, m1, v1)
    return block(h, w2, b2, g2, be2, m2, v2)


if __name__ == "__main__":
    key = jax.random.PRNGKey(0)
    N, Cin, Cout, H, W = 2, 4, 8, 16, 16
    ks = jax.random.split(key, 13)

    x = jax.random.normal(ks[0], (N, Cin, H, W), jnp.float32)
    w1 = 0.2 * jax.random.normal(ks[1], (Cout, Cin, 3, 3), jnp.float32)
    b1 = 0.1 * jax.random.normal(ks[2], (Cout,), jnp.float32)
    g1 = 1.0 + 0.1 * jax.random.normal(ks[3], (Cout,), jnp.float32)
    be1 = 0.1 * jax.random.normal(ks[4], (Cout,), jnp.float32)
    m1 = 0.1 * jax.random.normal(ks[5], (Cout,), jnp.float32)
    v1 = 1.0 + 0.5 * jax.random.uniform(ks[6], (Cout,), jnp.float32)
    w2 = 0.2 * jax.random.normal(ks[7], (Cout, Cout, 3, 3), jnp.float32)
    b2 = 0.1 * jax.random.normal(ks[8], (Cout,), jnp.float32)
    g2 = 1.0 + 0.1 * jax.random.normal(ks[9], (Cout,), jnp.float32)
    be2 = 0.1 * jax.random.normal(ks[10], (Cout,), jnp.float32)
    m2 = 0.1 * jax.random.normal(ks[11], (Cout,), jnp.float32)
    v2 = 1.0 + 0.5 * jax.random.uniform(ks[12], (Cout,), jnp.float32)
    params = (w1, b1, g1, be1, m1, v1, w2, b2, g2, be2, m2, v2)

    ref = jax.block_until_ready(down_reference(x, params))
    down_jit = jax.jit(down_forward, static_argnames=("row_tile",))

    # Test the auto tile plus two forced row tilings (exercises the halo path).
    for rt in (None, 4, 2):
        out = jax.block_until_ready(down_jit(x, params, row_tile=rt))
        assert out.shape == (N, Cout, H // 2, W // 2), out.shape
        max_err = float(jnp.max(jnp.abs(out - ref)))
        # bf16 MXU operands with f32 accumulation -> relaxed tolerance vs f32 reference.
        assert jnp.allclose(out, ref, rtol=1e-1, atol=1e-1), \
            f"row_tile={rt}: max abs err = {max_err}"

    print("KERNEL_OK")
</pallas_src>

<mosaic_0001>
module attributes {stable_mosaic.version = 11 : i64} {
  func.func @kernel(%arg0: i32, %arg1: i32, %arg2: memref<1x8x2x8x8xbf16, #tpu.memory_space<vmem>>, %arg3: memref<1x1x2x8x8xbf16, #tpu.memory_space<vmem>>, %arg4: memref<1x1x2x8x8xbf16, #tpu.memory_space<vmem>>, %arg5: memref<1x1x2x8x8xbf16, #tpu.memory_space<vmem>>, %arg6: memref<1x1x2x8x8xbf16, #tpu.memory_space<vmem>>, %arg7: memref<9x4x8xbf16, #tpu.memory_space<vmem>>, %arg8: memref<1x8xf32, #tpu.memory_space<vmem>>, %arg9: memref<9x8x8xbf16, #tpu.memory_space<vmem>>, %arg10: memref<1x8xf32, #tpu.memory_space<vmem>>, %arg11: memref<1x64x8xf32, #tpu.memory_space<vmem>>, %arg12: memref<112x4xbf16, #tpu.memory_space<vmem>>, %arg13: memref<96x8xbf16, #tpu.memory_space<vmem>>) attributes {dimension_semantics = [#tpu.dimension_semantics<parallel>, #tpu.dimension_semantics<parallel>], iteration_bounds = array<i64: 2, 1>, scalar_prefetch = 0 : i64, scratch_operands = 2 : i64, tpu.core_type = #tpu.core_type<tc>, window_params = [{transform_indices = @transform_0, window_bounds = array<i64: 1, 8, 2, 8, 8>}, {transform_indices = @transform_1, window_bounds = array<i64: 1, 1, 2, 8, 8>}, {transform_indices = @transform_2, window_bounds = array<i64: 1, 1, 2, 8, 8>}, {transform_indices = @transform_3, window_bounds = array<i64: 1, 1, 2, 8, 8>}, {transform_indices = @transform_4, window_bounds = array<i64: 1, 1, 2, 8, 8>}, {pipeline_mode = #tpu.pipeline_mode<synchronous>, transform_indices = @transform_5, window_bounds = array<i64: 9, 4, 8>}, {pipeline_mode = #tpu.pipeline_mode<synchronous>, transform_indices = @transform_6, window_bounds = array<i64: 1, 8>}, {pipeline_mode = #tpu.pipeline_mode<synchronous>, transform_indices = @transform_7, window_bounds = array<i64: 9, 8, 8>}, {pipeline_mode = #tpu.pipeline_mode<synchronous>, transform_indices = @transform_8, window_bounds = array<i64: 1, 8>}, {transform_indices = @transform_9, window_bounds = array<i64: 1, 64, 8>}]} {
    %c8_i32 = arith.constant 8 : i32
    %0 = arith.muli %arg1, %c8_i32 : i32
    %c0 = arith.constant 0 : index
    %c0_0 = arith.constant 0 : index
    %c0_1 = arith.constant 0 : index
    %c0_2 = arith.constant 0 : index
    %c0_3 = arith.constant 0 : index
    %1 = vector.load %arg2[%c0, %c0_0, %c0_1, %c0_2, %c0_3] : memref<1x8x2x8x8xbf16, #tpu.memory_space<vmem>>, vector<1x8x1x8x8xbf16>
    %2 = vector.shape_cast %1 : vector<1x8x1x8x8xbf16> to vector<8x8x8xbf16>
    %c0_4 = arith.constant 0 : index
    %c0_5 = arith.constant 0 : index
    %c1 = arith.constant 1 : index
    %c0_6 = arith.constant 0 : index
    %c0_7 = arith.constant 0 : index
    %3 = vector.load %arg2[%c0_4, %c0_5, %c1, %c0_6, %c0_7] : memref<1x8x2x8x8xbf16, #tpu.memory_space<vmem>>, vector<1x8x1x8x8xbf16>
    %4 = vector.shape_cast %3 : vector<1x8x1x8x8xbf16> to vector<8x8x8xbf16>
    %5 = arith.maximumf %2, %4 : vector<8x8x8xbf16>
    %6 = vector.extract_strided_slice %5 {offsets = [0, 0, 0], sizes = [8, 8, 4], strides = [1, 1, 1]} : vector<8x8x8xbf16> to vector<8x8x4xbf16>
    %7 = vector.extract_strided_slice %5 {offsets = [0, 0, 4], sizes = [8, 8, 4], strides = [1, 1, 1]} : vector<8x8x8xbf16> to vector<8x8x4xbf16>
    %8 = arith.maximumf %6, %7 : vector<8x8x4xbf16>
    %cst = arith.constant 0.000000e+00 : bf16
    %9 = vector.broadcast %cst : bf16 to vector<8x4xbf16>
    %c0_8 = arith.constant 0 : index
    %c0_9 = arith.constant 0 : index
    %10 = vector.load %arg12[%c0_8, %c0_9] : memref<112x4xbf16, #tpu.memory_space<vmem>>, vector<8x4xbf16>
    tpu.vector_store %arg12[%c0_8, %c0_9], %9 {strides = array<i32>} : memref<112x4xbf16, #tpu.memory_space<vmem>>, vector<8x4xbf16>,
    %c104 = arith.constant 104 : index
    %c0_10 = arith.constant 0 : index
    %11 = vector.load %arg12[%c104, %c0_10] : memref<112x4xbf16, #tpu.memory_space<vmem>>, vector<8x4xbf16>
    tpu.vector_store %arg12[%c104, %c0_10], %9 {strides = array<i32>} : memref<112x4xbf16, #tpu.memory_space<vmem>>, vector<8x4xbf16>,
    %c2_i32 = arith.constant 2 : i32
    %12 = arith.subi %0, %c2_i32 : i32
    %c0_i32 = arith.constant 0 : i32
    %13 = arith.cmpi sge, %12, %c0_i32 : i32
    %c0_11 = arith.constant 0 : index
    %c0_12 = arith.constant 0 : index
    %c0_13 = arith.constant 0 : index
    %c0_14 = arith.constant 0 : index
    %c0_15 = arith.constant 0 : index
    %14 = vector.load %arg3[%c0_11, %c0_12, %c0_13, %c0_14, %c0_15] : memref<1x1x2x8x8xbf16, #tpu.memory_space<vmem>>, vector<1x1x1x8x8xbf16>
    %15 = vector.shape_cast %14 : vector<1x1x1x8x8xbf16> to vector<8x8xbf16>
    %c0_16 = arith.constant 0 : index
    %c0_17 = arith.constant 0 : index
    %c1_18 = arith.constant 1 : index
    %c0_19 = arith.constant 0 : index
    %c0_20 = arith.constant 0 : index
    %16 = vector.load %arg3[%c0_16, %c0_17, %c1_18, %c0_19, %c0_20] : memref<1x1x2x8x8xbf16, #tpu.memory_space<vmem>>, vector<1x1x1x8x8xbf16>
    %17 = vector.shape_cast %16 : vector<1x1x1x8x8xbf16> to vector<8x8xbf16>
    %18 = arith.maximumf %15, %17 : vector<8x8xbf16>
    %19 = vector.extract_strided_slice %18 {offsets = [0, 0], sizes = [8, 4], strides = [1, 1]} : vector<8x8xbf16> to vector<8x4xbf16>
    %20 = vector.extract_strided_slice %18 {offsets = [0, 4], sizes = [8, 4], strides = [1, 1]} : vector<8x8xbf16> to vector<8x4xbf16>
    %21 = arith.maximumf %19, %20 : vector<8x4xbf16>
    %c0_i32_21 = arith.constant 0 : i32
    %22 = arith.sitofp %c0_i32_21 : i32 to bf16
    %23 = vector.broadcast %22 : bf16 to vector<8x4xbf16>
    %24 = arith.select %13, %21, %23 : vector<8x4xbf16>
    %c8 = arith.constant 8 : index
    %c0_22 = arith.constant 0 : index
    %25 = vector.load %arg12[%c8, %c0_22] : memref<112x4xbf16, #tpu.memory_space<vmem>>, vector<8x4xbf16>
    tpu.vector_store %arg12[%c8, %c0_22], %24 {strides = array<i32>} : memref<112x4xbf16, #tpu.memory_space<vmem>>, vector<8x4xbf16>,
    %c1_i32 = arith.constant 1 : i32
    %26 = arith.subi %0, %c1_i32 : i32
    %c0_i32_23 = arith.constant 0 : i32
    %27 = arith.cmpi sge, %26, %c0_i32_23 : i32
    %c0_24 = arith.constant 0 : index
    %c0_25 = arith.constant 0 : index
    %c0_26 = arith.constant 0 : index
    %c0_27 = arith.constant 0 : index
    %c0_28 = arith.constant 0 : index
    %28 = vector.load %arg4[%c0_24, %c0_25, %c0_26, %c0_27, %c0_28] : memref<1x1x2x8x8xbf16, #tpu.memory_space<vmem>>, vector<1x1x1x8x8xbf16>
    %29 = vector.shape_cast %28 : vector<1x1x1x8x8xbf16> to vector<8x8xbf16>
    %c0_29 = arith.constant 0 : index
    %c0_30 = arith.constant 0 : index
    %c1_31 = arith.constant 1 : index
    %c0_32 = arith.constant 0 : index
    %c0_33 = arith.constant 0 : index
    %30 = vector.load %arg4[%c0_29, %c0_30, %c1_31, %c0_32, %c0_33] : memref<1x1x2x8x8xbf16, #tpu.memory_space<vmem>>, vector<1x1x1x8x8xbf16>
    %31 = vector.shape_cast %30 : vector<1x1x1x8x8xbf16> to vector<8x8xbf16>
    %32 = arith.maximumf %29, %31 : vector<8x8xbf16>
    %33 = vector.extract_strided_slice %32 {offsets = [0, 0], sizes = [8, 4], strides = [1, 1]} : vector<8x8xbf16> to vector<8x4xbf16>
    %34 = vector.extract_strided_slice %32 {offsets = [0, 4], sizes = [8, 4], strides = [1, 1]} : vector<8x8xbf16> to vector<8x4xbf16>
    %35 = arith.maximumf %33, %34 : vector<8x4xbf16>
    %c0_i32_34 = arith.constant 0 : i32
    %36 = arith.sitofp %c0_i32_34 : i32 to bf16
    %37 = vector.broadcast %36 : bf16 to vector<8x4xbf16>
    %38 = arith.select %27, %35, %37 : vector<8x4xbf16>
    %c16 = arith.constant 16 : index
    %c0_35 = arith.constant 0 : index
    %39 = vector.load %arg12[%c16, %c0_35] : memref<112x4xbf16, #tpu.memory_space<vmem>>, vector<8x4xbf16>
    tpu.vector_store %arg12[%c16, %c0_35], %38 {strides = array<i32>} : memref<112x4xbf16, #tpu.memory_space<vmem>>, vector<8x4xbf16>,
    %c8_i32_36 = arith.constant 8 : i32
    %40 = arith.addi %0, %c8_i32_36 : i32
    %c8_i32_37 = arith.constant 8 : i32
    %41 = arith.cmpi slt, %40, %c8_i32_37 : i32
    %c0_38 = arith.constant 0 : index
    %c0_39 = arith.constant 0 : index
    %c0_40 = arith.constant 0 : index
    %c0_41 = arith.constant 0 : index
    %c0_42 = arith.constant 0 : index
    %42 = vector.load %arg5[%c0_38, %c0_39, %c0_40, %c0_41, %c0_42] : memref<1x1x2x8x8xbf16, #tpu.memory_space<vmem>>, vector<1x1x1x8x8xbf16>
    %43 = vector.shape_cast %42 : vector<1x1x1x8x8xbf16> to vector<8x8xbf16>
    %c0_43 = arith.constant 0 : index
    %c0_44 = arith.constant 0 : index
    %c1_45 = arith.constant 1 : index
    %c0_46 = arith.constant 0 : index
    %c0_47 = arith.constant 0 : index
    %44 = vector.load %arg5[%c0_43, %c0_44, %c1_45, %c0_46, %c0_47] : memref<1x1x2x8x8xbf16, #tpu.memory_space<vmem>>, vector<1x1x1x8x8xbf16>
    %45 = vector.shape_cast %44 : vector<1x1x1x8x8xbf16> to vector<8x8xbf16>
    %46 = arith.maximumf %43, %45 : vector<8x8xbf16>
    %47 = vector.extract_strided_slice %46 {offsets = [0, 0], sizes = [8, 4], strides = [1, 1]} : vector<8x8xbf16> to vector<8x4xbf16>
    %48 = vector.extract_strided_slice %46 {offsets = [0, 4], sizes = [8, 4], strides = [1, 1]} : vector<8x8xbf16> to vector<8x4xbf16>
    %49 = arith.maximumf %47, %48 : vector<8x4xbf16>
    %c0_i32_48 = arith.constant 0 : i32
    %50 = arith.sitofp %c0_i32_48 : i32 to bf16
    %51 = vector.broadcast %50 : bf16 to vector<8x4xbf16>
    %52 = arith.select %41, %49, %51 : vector<8x4xbf16>
    %c88 = arith.constant 88 : index
    %c0_49 = arith.constant 0 : index
    %53 = vector.load %arg12[%c88, %c0_49] : memref<112x4xbf16, #tpu.memory_space<vmem>>, vector<8x4xbf16>
    tpu.vector_store %arg12[%c88, %c0_49], %52 {strides = array<i32>} : memref<112x4xbf16, #tpu.memory_space<vmem>>, vector<8x4xbf16>,
    %c8_i32_50 = arith.constant 8 : i32
    %54 = arith.addi %0, %c8_i32_50 : i32
    %c1_i32_51 = arith.constant 1 : i32
    %55 = arith.addi %54, %c1_i32_51 : i32
    %c8_i32_52 = arith.constant 8 : i32
    %56 = arith.cmpi slt, %55, %c8_i32_52 : i32
    %c0_53 = arith.constant 0 : index
    %c0_54 = arith.constant 0 : index
    %c0_55 = arith.constant 0 : index
    %c0_56 = arith.constant 0 : index
    %c0_57 = arith.constant 0 : index
    %57 = vector.load %arg6[%c0_53, %c0_54, %c0_55, %c0_56, %c0_57] : memref<1x1x2x8x8xbf16, #tpu.memory_space<vmem>>, vector<1x1x1x8x8xbf16>
    %58 = vector.shape_cast %57 : vector<1x1x1x8x8xbf16> to vector<8x8xbf16>
    %c0_58 = arith.constant 0 : index
    %c0_59 = arith.constant 0 : index
    %c1_60 = arith.constant 1 : index
    %c0_61 = arith.constant 0 : index
    %c0_62 = arith.constant 0 : index
    %59 = vector.load %arg6[%c0_58, %c0_59, %c1_60, %c0_61, %c0_62] : memref<1x1x2x8x8xbf16, #tpu.memory_space<vmem>>, vector<1x1x1x8x8xbf16>
    %60 = vector.shape_cast %59 : vector<1x1x1x8x8xbf16> to vector<8x8xbf16>
    %61 = arith.maximumf %58, %60 : vector<8x8xbf16>
    %62 = vector.extract_strided_slice %61 {offsets = [0, 0], sizes = [8, 4], strides = [1, 1]} : vector<8x8xbf16> to vector<8x4xbf16>
    %63 = vector.extract_strided_slice %61 {offsets = [0, 4], sizes = [8, 4], strides = [1, 1]} : vector<8x8xbf16> to vector<8x4xbf16>
    %64 = arith.maximumf %62, %63 : vector<8x4xbf16>
    %c0_i32_63 = arith.constant 0 : i32
    %65 = arith.sitofp %c0_i32_63 : i32 to bf16
    %66 = vector.broadcast %65 : bf16 to vector<8x4xbf16>
    %67 = arith.select %56, %64, %66 : vector<8x4xbf16>
    %c96 = arith.constant 96 : index
    %c0_64 = arith.constant 0 : index
    %68 = vector.load %arg12[%c96, %c0_64] : memref<112x4xbf16, #tpu.memory_space<vmem>>, vector<8x4xbf16>
    tpu.vector_store %arg12[%c96, %c0_64], %67 {strides = array<i32>} : memref<112x4xbf16, #tpu.memory_space<vmem>>, vector<8x4xbf16>,
    %69 = vector.shape_cast %8 : vector<8x8x4xbf16> to vector<64x4xbf16>
    %c24 = arith.constant 24 : index
    %c0_65 = arith.constant 0 : index
    %70 = vector.load %arg12[%c24, %c0_65] : memref<112x4xbf16, #tpu.memory_space<vmem>>, vector<64x4xbf16>
    tpu.vector_store %arg12[%c24, %c0_65], %69 {strides = array<i32>} : memref<112x4xbf16, #tpu.memory_space<vmem>>, vector<64x4xbf16>,
    %71 = tpu.iota {dimensions = array<i32: 0>} : vector<80x1xi32>
    %c8_i32_66 = arith.constant 8 : i32
    %c0_i32_67 = arith.constant 0 : i32
    %72 = arith.cmpi eq, %c8_i32_66, %c0_i32_67 : i32
    %c1_i32_68 = arith.constant 1 : i32
    %73 = arith.select %72, %c1_i32_68, %c8_i32_66 : i32
    %74 = vector.broadcast %73 : i32 to vector<80x1xi32>
    %75 = arith.remsi %71, %74 : vector<80x1xi32>
    %c0_i32_69 = arith.constant 0 : i32
    %76 = vector.broadcast %c0_i32_69 : i32 to vector<80x1xi32>
    %77 = arith.cmpi ne, %75, %76 : vector<80x1xi32>
    %c0_i32_70 = arith.constant 0 : i32
    %78 = vector.broadcast %c0_i32_70 : i32 to vector<80x1xi32>
    %79 = arith.cmpi slt, %75, %78 : vector<80x1xi32>
    %c0_i32_71 = arith.constant 0 : i32
    %80 = arith.cmpi slt, %73, %c0_i32_71 : i32
    %81 = vector.broadcast %80 : i1 to vector<80x1xi1>
    %82 = vector.broadcast %81 : vector<80x1xi1> to vector<80x1xi1>
    %83 = arith.xori %79, %82 : vector<80x1xi1>
    %84 = arith.andi %83, %77 : vector<80x1xi1>
    %85 = vector.broadcast %73 : i32 to vector<80x1xi32>
    %86 = arith.addi %75, %85 : vector<80x1xi32>
    %87 = arith.select %84, %86, %75 : vector<80x1xi1>, vector<80x1xi32>
    %c0_i32_72 = arith.constant 0 : i32
    %88 = vector.broadcast %c0_i32_72 : i32 to vector<80x1xi32>
    %89 = arith.cmpi ne, %87, %88 : vector<80x1xi32>
    %c7_i32 = arith.constant 7 : i32
    %90 = vector.broadcast %c7_i32 : i32 to vector<80x1xi32>
    %91 = arith.cmpi ne, %87, %90 : vector<80x1xi32>
    %cst_73 = arith.constant 0.000000e+00 : f32
    %92 = vector.broadcast %cst_73 : f32 to vector<80x8xf32>
    %c7 = arith.constant 7 : index
    %c0_74 = arith.constant 0 : index
    %93 = vector.load %arg12[%c7, %c0_74] : memref<112x4xbf16, #tpu.memory_space<vmem>>, vector<80x4xbf16>
    %c0_i32_75 = arith.constant 0 : i32
    %94 = arith.sitofp %c0_i32_75 : i32 to bf16
    %95 = vector.shape_cast %89 : vector<80x1xi1> to vector<80x1xi1>
    %96 = vector.broadcast %95 : vector<80x1xi1> to vector<80x4xi1>
    %97 = vector.broadcast %94 : bf16 to vector<80x4xbf16>
    %98 = arith.select %96, %93, %97 : vector<80x4xi1>, vector<80x4xbf16>
    %c0_76 = arith.constant 0 : index
    %c0_77 = arith.constant 0 : index
    %c0_78 = arith.constant 0 : index
    %99 = vector.load %arg7[%c0_76, %c0_77, %c0_78] : memref<9x4x8xbf16, #tpu.memory_space<vmem>>, vector<1x4x8xbf16>
    %100 = vector.shape_cast %99 : vector<1x4x8xbf16> to vector<4x8xbf16>
    %cst_79 = arith.constant dense<0.000000e+00> : vector<80x8xf32>
    %101 = tpu.matmul %98, %100, %cst_79 {dimension_numbers = #tpu.dot_dimension_numbers<[1], [0], [0], [1], [0, 0, 1, 1], [], []>} : vector<80x4xbf16>, vector<4x8xbf16>, vector<80x8xf32> -> vector<80x8xf32>
    %102 = arith.addf %92, %101 : vector<80x8xf32>
    %c8_80 = arith.constant 8 : index
    %c0_81 = arith.constant 0 : index
    %103 = vector.load %arg12[%c8_80, %c0_81] : memref<112x4xbf16, #tpu.memory_space<vmem>>, vector<80x4xbf16>
    %c1_82 = arith.constant 1 : index
    %c0_83 = arith.constant 0 : index
    %c0_84 = arith.constant 0 : index
    %104 = vector.load %arg7[%c1_82, %c0_83, %c0_84] : memref<9x4x8xbf16, #tpu.memory_space<vmem>>, vector<1x4x8xbf16>
    %105 = vector.shape_cast %104 : vector<1x4x8xbf16> to vector<4x8xbf16>
    %cst_85 = arith.constant dense<0.000000e+00> : vector<80x8xf32>
    %106 = tpu.matmul %103, %105, %cst_85 {dimension_numbers = #tpu.dot_dimension_numbers<[1], [0], [0], [1], [0, 0, 1, 1], [], []>} : vector<80x4xbf16>, vector<4x8xbf16>, vector<80x8xf32> -> vector<80x8xf32>
    %107 = arith.addf %102, %106 : vector<80x8xf32>
    %c9 = arith.constant 9 : index
    %c0_86 = arith.constant 0 : index
    %108 = vector.load %arg12[%c9, %c0_86] : memref<112x4xbf16, #tpu.memory_space<vmem>>, vector<80x4xbf16>
    %c0_i32_87 = arith.constant 0 : i32
    %109 = arith.sitofp %c0_i32_87 : i32 to bf16
    %110 = vector.shape_cast %91 : vector<80x1xi1> to vector<80x1xi1>
    %111 = vector.broadcast %110 : vector<80x1xi1> to vector<80x4xi1>
    %112 = vector.broadcast %109 : bf16 to vector<80x4xbf16>
    %113 = arith.select %111, %108, %112 : vector<80x4xi1>, vector<80x4xbf16>
    %c2 = arith.constant 2 : index
    %c0_88 = arith.constant 0 : index
    %c0_89 = arith.constant 0 : index
    %114 = vector.load %arg7[%c2, %c0_88, %c0_89] : memref<9x4x8xbf16, #tpu.memory_space<vmem>>, vector<1x4x8xbf16>
    %115 = vector.shape_cast %114 : vector<1x4x8xbf16> to vector<4x8xbf16>
    %cst_90 = arith.constant dense<0.000000e+00> : vector<80x8xf32>
    %116 = tpu.matmul %113, %115, %cst_90 {dimension_numbers = #tpu.dot_dimension_numbers<[1], [0], [0], [1], [0, 0, 1, 1], [], []>} : vector<80x4xbf16>, vector<4x8xbf16>, vector<80x8xf32> -> vector<80x8xf32>
    %117 = arith.addf %107, %116 : vector<80x8xf32>
    %c15 = arith.constant 15 : index
    %c0_91 = arith.constant 0 : index
    %118 = vector.load %arg12[%c15, %c0_91] : memref<112x4xbf16, #tpu.memory_space<vmem>>, vector<80x4xbf16>
    %c0_i32_92 = arith.constant 0 : i32
    %119 = arith.sitofp %c0_i32_92 : i32 to bf16
    %120 = vector.shape_cast %89 : vector<80x1xi1> to vector<80x1xi1>
    %121 = vector.broadcast %120 : vector<80x1xi1> to vector<80x4xi1>
    %122 = vector.broadcast %119 : bf16 to vector<80x4xbf16>
    %123 = arith.select %121, %118, %122 : vector<80x4xi1>, vector<80x4xbf16>
    %c3 = arith.constant 3 : index
    %c0_93 = arith.constant 0 : index
    %c0_94 = arith.constant 0 : index
    %124 = vector.load %arg7[%c3, %c0_93, %c0_94] : memref<9x4x8xbf16, #tpu.memory_space<vmem>>, vector<1x4x8xbf16>
    %125 = vector.shape_cast %124 : vector<1x4x8xbf16> to vector<4x8xbf16>
    %cst_95 = arith.constant dense<0.000000e+00> : vector<80x8xf32>
    %126 = tpu.matmul %123, %125, %cst_95 {dimension_numbers = #tpu.dot_dimension_numbers<[1], [0], [0], [1], [0, 0, 1, 1], [], []>} : vector<80x4xbf16>, vector<4x8xbf16>, vector<80x8xf32> -> vector<80x8xf32>
    %127 = arith.addf %117, %126 : vector<80x8xf32>
    %c16_96 = arith.constant 16 : index
    %c0_97 = arith.constant 0 : index
    %128 = vector.load %arg12[%c16_96, %c0_97] : memref<112x4xbf16, #tpu.memory_space<vmem>>, vector<80x4xbf16>
    %c4 = arith.constant 4 : index
    %c0_98 = arith.constant 0 : index
    %c0_99 = arith.constant 0 : index
    %129 = vector.load %arg7[%c4, %c0_98, %c0_99] : memref<9x4x8xbf16, #tpu.memory_space<vmem>>, vector<1x4x8xbf16>
    %130 = vector.shape_cast %129 : vector<1x4x8xbf16> to vector<4x8xbf16>
    %cst_100 = arith.constant dense<0.000000e+00> : vector<80x8xf32>
    %131 = tpu.matmul %128, %130, %cst_100 {dimension_numbers = #tpu.dot_dimension_numbers<[1], [0], [0], [1], [0, 0, 1, 1], [], []>} : vector<80x4xbf16>, vector<4x8xbf16>, vector<80x8xf32> -> vector<80x8xf32>
    %132 = arith.addf %127, %131 : vector<80x8xf32>
    %c17 = arith.constant 17 : index
    %c0_101 = arith.constant 0 : index
    %133 = vector.load %arg12[%c17, %c0_101] : memref<112x4xbf16, #tpu.memory_space<vmem>>, vector<80x4xbf16>
    %c0_i32_102 = arith.constant 0 : i32
    %134 = arith.sitofp %c0_i32_102 : i32 to bf16
    %135 = vector.shape_cast %91 : vector<80x1xi1> to vector<80x1xi1>
    %136 = vector.broadcast %135 : vector<80x1xi1> to vector<80x4xi1>
    %137 = vector.broadcast %134 : bf16 to vector<80x4xbf16>
    %138 = arith.select %136, %133, %137 : vector<80x4xi1>, vector<80x4xbf16>
    %c5 = arith.constant 5 : index
    %c0_103 = arith.constant 0 : index
    %c0_104 = arith.constant 0 : index
    %139 = vector.load %arg7[%c5, %c0_103, %c0_104] : memref<9x4x8xbf16, #tpu.memory_space<vmem>>, vector<1x4x8xbf16>
    %140 = vector.shape_cast %139 : vector<1x4x8xbf16> to vector<4x8xbf16>
    %cst_105 = arith.constant dense<0.000000e+00> : vector<80x8xf32>
    %141 = tpu.matmul %138, %140, %cst_105 {dimension_numbers = #tpu.dot_dimension_numbers<[1], [0], [0], [1], [0, 0, 1, 1], [], []>} : vector<80x4xbf16>, vector<4x8xbf16>, vector<80x8xf32> -> vector<80x8xf32>
    %142 = arith.addf %132, %141 : vector<80x8xf32>
    %c23 = arith.constant 23 : index
    %c0_106 = arith.constant 0 : index
    %143 = vector.load %arg12[%c23, %c0_106] : memref<112x4xbf16, #tpu.memory_space<vmem>>, vector<80x4xbf16>
    %c0_i32_107 = arith.constant 0 : i32
    %144 = arith.sitofp %c0_i32_107 : i32 to bf16
    %145 = vector.shape_cast %89 : vector<80x1xi1> to vector<80x1xi1>
    %146 = vector.broadcast %145 : vector<80x1xi1> to vector<80x4xi1>
    %147 = vector.broadcast %144 : bf16 to vector<80x4xbf16>
    %148 = arith.select %146, %143, %147 : vector<80x4xi1>, vector<80x4xbf16>
    %c6 = arith.constant 6 : index
    %c0_108 = arith.constant 0 : index
    %c0_109 = arith.constant 0 : index
    %149 = vector.load %arg7[%c6, %c0_108, %c0_109] : memref<9x4x8xbf16, #tpu.memory_space<vmem>>, vector<1x4x8xbf16>
    %150 = vector.shape_cast %149 : vector<1x4x8xbf16> to vector<4x8xbf16>
    %cst_110 = arith.constant dense<0.000000e+00> : vector<80x8xf32>
    %151 = tpu.matmul %148, %150, %cst_110 {dimension_numbers = #tpu.dot_dimension_numbers<[1], [0], [0], [1], [0, 0, 1, 1], [], []>} : vector<80x4xbf16>, vector<4x8xbf16>, vector<80x8xf32> -> vector<80x8xf32>
    %152 = arith.addf %142, %151 : vector<80x8xf32>
    %c24_111 = arith.constant 24 : index
    %c0_112 = arith.constant 0 : index
    %153 = vector.load %arg12[%c24_111, %c0_112] : memref<112x4xbf16, #tpu.memory_space<vmem>>, vector<80x4xbf16>
    %c7_113 = arith.constant 7 : index
    %c0_114 = arith.constant 0 : index
    %c0_115 = arith.constant 0 : index
    %154 = vector.load %arg7[%c7_113, %c0_114, %c0_115] : memref<9x4x8xbf16, #tpu.memory_space<vmem>>, vector<1x4x8xbf16>
    %155 = vector.shape_cast %154 : vector<1x4x8xbf16> to vector<4x8xbf16>
    %cst_116 = arith.constant dense<0.000000e+00> : vector<80x8xf32>
    %156 = tpu.matmul %153, %155, %cst_116 {dimension_numbers = #tpu.dot_dimension_numbers<[1], [0], [0], [1], [0, 0, 1, 1], [], []>} : vector<80x4xbf16>, vector<4x8xbf16>, vector<80x8xf32> -> vector<80x8xf32>
    %157 = arith.addf %152, %156 : vector<80x8xf32>
    %c25 = arith.constant 25 : index
    %c0_117 = arith.constant 0 : index
    %158 = vector.load %arg12[%c25, %c0_117] : memref<112x4xbf16, #tpu.memory_space<vmem>>, vector<80x4xbf16>
    %c0_i32_118 = arith.constant 0 : i32
    %159 = arith.sitofp %c0_i32_118 : i32 to bf16
    %160 = vector.shape_cast %91 : vector<80x1xi1> to vector<80x1xi1>
    %161 = vector.broadcast %160 : vector<80x1xi1> to vector<80x4xi1>
    %162 = vector.broadcast %159 : bf16 to vector<80x4xbf16>
    %163 = arith.select %161, %158, %162 : vector<80x4xi1>, vector<80x4xbf16>
    %c8_119 = arith.constant 8 : index
    %c0_120 = arith.constant 0 : index
    %c0_121 = arith.constant 0 : index
    %164 = vector.load %arg7[%c8_119, %c0_120, %c0_121] : memref<9x4x8xbf16, #tpu.memory_space<vmem>>, vector<1x4x8xbf16>
    %165 = vector.shape_cast %164 : vector<1x4x8xbf16> to vector<4x8xbf16>
    %cst_122 = arith.constant dense<0.000000e+00> : vector<80x8xf32>
    %166 = tpu.matmul %163, %165, %cst_122 {dimension_numbers = #tpu.dot_dimension_numbers<[1], [0], [0], [1], [0, 0, 1, 1], [], []>} : vector<80x4xbf16>, vector<4x8xbf16>, vector<80x8xf32> -> vector<80x8xf32>
    %167 = arith.addf %157, %166 : vector<80x8xf32>
    %c0_123 = arith.constant 0 : index
    %c0_124 = arith.constant 0 : index
    %168 = vector.load %arg8[%c0_123, %c0_124] : memref<1x8xf32, #tpu.memory_space<vmem>>, vector<1x8xf32>
    %169 = vector.broadcast %168 : vector<1x8xf32> to vector<80x8xf32>
    %170 = arith.addf %167, %169 : vector<80x8xf32>
    %cst_125 = arith.constant 0.000000e+00 : f32
    %171 = vector.broadcast %cst_125 : f32 to vector<80x8xf32>
    %172 = arith.maximumf %170, %171 : vector<80x8xf32>
    %173 = tpu.iota {dimensions = array<i32: 0>} : vector<80x1xi32>
    %c0_i32_126 = arith.constant 0 : i32
    %174 = arith.cmpi eq, %arg1, %c0_i32_126 : i32
    %c8_i32_127 = arith.constant 8 : i32
    %175 = vector.broadcast %c8_i32_127 : i32 to vector<80x1xi32>
    %176 = arith.cmpi slt, %173, %175 : vector<80x1xi32>
    %177 = vector.broadcast %174 : i1 to vector<80x1xi1>
    %178 = arith.andi %177, %176 : vector<80x1xi1>
    %c0_i32_128 = arith.constant 0 : i32
    %179 = arith.cmpi eq, %arg1, %c0_i32_128 : i32
    %c72_i32 = arith.constant 72 : i32
    %180 = vector.broadcast %c72_i32 : i32 to vector<80x1xi32>
    %181 = arith.cmpi sge, %173, %180 : vector<80x1xi32>
    %182 = vector.broadcast %179 : i1 to vector<80x1xi1>
    %183 = arith.andi %182, %181 : vector<80x1xi1>
    %184 = arith.ori %178, %183 : vector<80x1xi1>
    %cst_129 = arith.constant 0.000000e+00 : f32
    %185 = vector.shape_cast %184 : vector<80x1xi1> to vector<80x1xi1>
    %186 = vector.broadcast %185 : vector<80x1xi1> to vector<80x8xi1>
    %187 = vector.broadcast %cst_129 : f32 to vector<80x8xf32>
    %188 = arith.select %186, %187, %172 : vector<80x8xi1>, vector<80x8xf32>
    %cst_130 = arith.constant 0.000000e+00 : bf16
    %189 = vector.broadcast %cst_130 : bf16 to vector<8x8xbf16>
    %c0_131 = arith.constant 0 : index
    %c0_132 = arith.constant 0 : index
    %190 = vector.load %arg13[%c0_131, %c0_132] : memref<96x8xbf16, #tpu.memory_space<vmem>>, vector<8x8xbf16>
    tpu.vector_store %arg13[%c0_131, %c0_132], %189 {strides = array<i32>} : memref<96x8xbf16, #tpu.memory_space<vmem>>, vector<8x8xbf16>,
    %c88_133 = arith.constant 88 : index
    %c0_134 = arith.constant 0 : index
    %191 = vector.load %arg13[%c88_133, %c0_134] : memref<96x8xbf16, #tpu.memory_space<vmem>>, vector<8x8xbf16>
    tpu.vector_store %arg13[%c88_133, %c0_134], %189 {strides = array<i32>} : memref<96x8xbf16, #tpu.memory_space<vmem>>, vector<8x8xbf16>,
    %192 = arith.truncf %188 : vector<80x8xf32> to vector<80x8xbf16>
    %c8_135 = arith.constant 8 : index
    %c0_136 = arith.constant 0 : index
    %193 = vector.load %arg13[%c8_135, %c0_136] : memref<96x8xbf16, #tpu.memory_space<vmem>>, vector<80x8xbf16>
    tpu.vector_store %arg13[%c8_135, %c0_136], %192 {strides = array<i32>} : memref<96x8xbf16, #tpu.memory_space<vmem>>, vector<80x8xbf16>,
    %194 = tpu.iota {dimensions = array<i32: 0>} : vector<64x1xi32>
    %c8_i32_137 = arith.constant 8 : i32
    %c0_i32_138 = arith.constant 0 : i32
    %195 = arith.cmpi eq, %c8_i32_137, %c0_i32_138 : i32
    %c1_i32_139 = arith.constant 1 : i32
    %196 = arith.select %195, %c1_i32_139, %c8_i32_137 : i32
    %197 = vector.broadcast %196 : i32 to vector<64x1xi32>
    %198 = arith.remsi %194, %197 : vector<64x1xi32>
    %c0_i32_140 = arith.constant 0 : i32
    %199 = vector.broadcast %c0_i32_140 : i32 to vector<64x1xi32>
    %200 = arith.cmpi ne, %198, %199 : vector<64x1xi32>
    %c0_i32_141 = arith.constant 0 : i32
    %201 = vector.broadcast %c0_i32_141 : i32 to vector<64x1xi32>
    %202 = arith.cmpi slt, %198, %201 : vector<64x1xi32>
    %c0_i32_142 = arith.constant 0 : i32
    %203 = arith.cmpi slt, %196, %c0_i32_142 : i32
    %204 = vector.broadcast %203 : i1 to vector<64x1xi1>
    %205 = vector.broadcast %204 : vector<64x1xi1> to vector<64x1xi1>
    %206 = arith.xori %202, %205 : vector<64x1xi1>
    %207 = arith.andi %206, %200 : vector<64x1xi1>
    %208 = vector.broadcast %196 : i32 to vector<64x1xi32>
    %209 = arith.addi %198, %208 : vector<64x1xi32>
    %210 = arith.select %207, %209, %198 : vector<64x1xi1>, vector<64x1xi32>
    %c0_i32_143 = arith.constant 0 : i32
    %211 = vector.broadcast %c0_i32_143 : i32 to vector<64x1xi32>
    %212 = arith.cmpi ne, %210, %211 : vector<64x1xi32>
    %c7_i32_144 = arith.constant 7 : i32
    %213 = vector.broadcast %c7_i32_144 : i32 to vector<64x1xi32>
    %214 = arith.cmpi ne, %210, %213 : vector<64x1xi32>
    %cst_145 = arith.constant 0.000000e+00 : f32
    %215 = vector.broadcast %cst_145 : f32 to vector<64x8xf32>
    %c7_146 = arith.constant 7 : index
    %c0_147 = arith.constant 0 : index
    %216 = vector.load %arg13[%c7_146, %c0_147] : memref<96x8xbf16, #tpu.memory_space<vmem>>, vector<64x8xbf16>
    %c0_i32_148 = arith.constant 0 : i32
    %217 = arith.sitofp %c0_i32_148 : i32 to bf16
    %218 = vector.shape_cast %212 : vector<64x1xi1> to vector<64x1xi1>
    %219 = vector.broadcast %218 : vector<64x1xi1> to vector<64x8xi1>
    %220 = vector.broadcast %217 : bf16 to vector<64x8xbf16>
    %221 = arith.select %219, %216, %220 : vector<64x8xi1>, vector<64x8xbf16>
    %c0_149 = arith.constant 0 : index
    %c0_150 = arith.constant 0 : index
    %c0_151 = arith.constant 0 : index
    %222 = vector.load %arg9[%c0_149, %c0_150, %c0_151] : memref<9x8x8xbf16, #tpu.memory_space<vmem>>, vector<1x8x8xbf16>
    %223 = vector.shape_cast %222 : vector<1x8x8xbf16> to vector<8x8xbf16>
    %cst_152 = arith.constant dense<0.000000e+00> : vector<64x8xf32>
    %224 = tpu.matmul %221, %223, %cst_152 {dimension_numbers = #tpu.dot_dimension_numbers<[1], [0], [0], [1], [0, 0, 1, 1], [], []>} : vector<64x8xbf16>, vector<8x8xbf16>, vector<64x8xf32> -> vector<64x8xf32>
    %225 = arith.addf %215, %224 : vector<64x8xf32>
    %c8_153 = arith.constant 8 : index
    %c0_154 = arith.constant 0 : index
    %226 = vector.load %arg13[%c8_153, %c0_154] : memref<96x8xbf16, #tpu.memory_space<vmem>>, vector<64x8xbf16>
    %c1_155 = arith.constant 1 : index
    %c0_156 = arith.constant 0 : index
    %c0_157 = arith.constant 0 : index
    %227 = vector.load %arg9[%c1_155, %c0_156, %c0_157] : memref<9x8x8xbf16, #tpu.memory_space<vmem>>, vector<1x8x8xbf16>
    %228 = vector.shape_cast %227 : vector<1x8x8xbf16> to vector<8x8xbf16>
    %cst_158 = arith.constant dense<0.000000e+00> : vector<64x8xf32>
    %229 = tpu.matmul %226, %228, %cst_158 {dimension_numbers = #tpu.dot_dimension_numbers<[1], [0], [0], [1], [0, 0, 1, 1], [], []>} : vector<64x8xbf16>, vector<8x8xbf16>, vector<64x8xf32> -> vector<64x8xf32>
    %230 = arith.addf %225, %229 : vector<64x8xf32>
    %c9_159 = arith.constant 9 : index
    %c0_160 = arith.constant 0 : index
    %231 = vector.load %arg13[%c9_159, %c0_160] : memref<96x8xbf16, #tpu.memory_space<vmem>>, vector<64x8xbf16>
    %c0_i32_161 = arith.constant 0 : i32
    %232 = arith.sitofp %c0_i32_161 : i32 to bf16
    %233 = vector.shape_cast %214 : vector<64x1xi1> to vector<64x1xi1>
    %234 = vector.broadcast %233 : vector<64x1xi1> to vector<64x8xi1>
    %235 = vector.broadcast %232 : bf16 to vector<64x8xbf16>
    %236 = arith.select %234, %231, %235 : vector<64x8xi1>, vector<64x8xbf16>
    %c2_162 = arith.constant 2 : index
    %c0_163 = arith.constant 0 : index
    %c0_164 = arith.constant 0 : index
    %237 = vector.load %arg9[%c2_162, %c0_163, %c0_164] : memref<9x8x8xbf16, #tpu.memory_space<vmem>>, vector<1x8x8xbf16>
    %238 = vector.shape_cast %237 : vector<1x8x8xbf16> to vector<8x8xbf16>
    %cst_165 = arith.constant dense<0.000000e+00> : vector<64x8xf32>
    %239 = tpu.matmul %236, %238, %cst_165 {dimension_numbers = #tpu.dot_dimension_numbers<[1], [0], [0], [1], [0, 0, 1, 1], [], []>} : vector<64x8xbf16>, vector<8x8xbf16>, vector<64x8xf32> -> vector<64x8xf32>
    %240 = arith.addf %230, %239 : vector<64x8xf32>
    %c15_166 = arith.constant 15 : index
    %c0_167 = arith.constant 0 : index
    %241 = vector.load %arg13[%c15_166, %c0_167] : memref<96x8xbf16, #tpu.memory_space<vmem>>, vector<64x8xbf16>
    %c0_i32_168 = arith.constant 0 : i32
    %242 = arith.sitofp %c0_i32_168 : i32 to bf16
    %243 = vector.shape_cast %212 : vector<64x1xi1> to vector<64x1xi1>
    %244 = vector.broadcast %243 : vector<64x1xi1> to vector<64x8xi1>
    %245 = vector.broadcast %242 : bf16 to vector<64x8xbf16>
    %246 = arith.select %244, %241, %245 : vector<64x8xi1>, vector<64x8xbf16>
    %c3_169 = arith.constant 3 : index
    %c0_170 = arith.constant 0 : index
    %c0_171 = arith.constant 0 : index
    %247 = vector.load %arg9[%c3_169, %c0_170, %c0_171] : memref<9x8x8xbf16, #tpu.memory_space<vmem>>, vector<1x8x8xbf16>
    %248 = vector.shape_cast %247 : vector<1x8x8xbf16> to vector<8x8xbf16>
    %cst_172 = arith.constant dense<0.000000e+00> : vector<64x8xf32>
    %249 = tpu.matmul %246, %248, %cst_172 {dimension_numbers = #tpu.dot_dimension_numbers<[1], [0], [0], [1], [0, 0, 1, 1], [], []>} : vector<64x8xbf16>, vector<8x8xbf16>, vector<64x8xf32> -> vector<64x8xf32>
    %250 = arith.addf %240, %249 : vector<64x8xf32>
    %c16_173 = arith.constant 16 : index
    %c0_174 = arith.constant 0 : index
    %251 = vector.load %arg13[%c16_173, %c0_174] : memref<96x8xbf16, #tpu.memory_space<vmem>>, vector<64x8xbf16>
    %c4_175 = arith.constant 4 : index
    %c0_176 = arith.constant 0 : index
    %c0_177 = arith.constant 0 : index
    %252 = vector.load %arg9[%c4_175, %c0_176, %c0_177] : memref<9x8x8xbf16, #tpu.memory_space<vmem>>, vector<1x8x8xbf16>
    %253 = vector.shape_cast %252 : vector<1x8x8xbf16> to vector<8x8xbf16>
    %cst_178 = arith.constant dense<0.000000e+00> : vector<64x8xf32>
    %254 = tpu.matmul %251, %253, %cst_178 {dimension_numbers = #tpu.dot_dimension_numbers<[1], [0], [0], [1], [0, 0, 1, 1], [], []>} : vector<64x8xbf16>, vector<8x8xbf16>, vector<64x8xf32> -> vector<64x8xf32>
    %255 = arith.addf %250, %254 : vector<64x8xf32>
    %c17_179 = arith.constant 17 : index
    %c0_180 = arith.constant 0 : index
    %256 = vector.load %arg13[%c17_179, %c0_180] : memref<96x8xbf16, #tpu.memory_space<vmem>>, vector<64x8xbf16>
    %c0_i32_181 = arith.constant 0 : i32
    %257 = arith.sitofp %c0_i32_181 : i32 to bf16
    %258 = vector.shape_cast %214 : vector<64x1xi1> to vector<64x1xi1>
    %259 = vector.broadcast %258 : vector<64x1xi1> to vector<64x8xi1>
    %260 = vector.broadcast %257 : bf16 to vector<64x8xbf16>
    %261 = arith.select %259, %256, %260 : vector<64x8xi1>, vector<64x8xbf16>
    %c5_182 = arith.constant 5 : index
    %c0_183 = arith.constant 0 : index
    %c0_184 = arith.constant 0 : index
    %262 = vector.load %arg9[%c5_182, %c0_183, %c0_184] : memref<9x8x8xbf16, #tpu.memory_space<vmem>>, vector<1x8x8xbf16>
    %263 = vector.shape_cast %262 : vector<1x8x8xbf16> to vector<8x8xbf16>
    %cst_185 = arith.constant dense<0.000000e+00> : vector<64x8xf32>
    %264 = tpu.matmul %261, %263, %cst_185 {dimension_numbers = #tpu.dot_dimension_numbers<[1], [0], [0], [1], [0, 0, 1, 1], [], []>} : vector<64x8xbf16>, vector<8x8xbf16>, vector<64x8xf32> -> vector<64x8xf32>
    %265 = arith.addf %255, %264 : vector<64x8xf32>
    %c23_186 = arith.constant 23 : index
    %c0_187 = arith.constant 0 : index
    %266 = vector.load %arg13[%c23_186, %c0_187] : memref<96x8xbf16, #tpu.memory_space<vmem>>, vector<64x8xbf16>
    %c0_i32_188 = arith.constant 0 : i32
    %267 = arith.sitofp %c0_i32_188 : i32 to bf16
    %268 = vector.shape_cast %212 : vector<64x1xi1> to vector<64x1xi1>
    %269 = vector.broadcast %268 : vector<64x1xi1> to vector<64x8xi1>
    %270 = vector.broadcast %267 : bf16 to vector<64x8xbf16>
    %271 = arith.select %269, %266, %270 : vector<64x8xi1>, vector<64x8xbf16>
    %c6_189 = arith.constant 6 : index
    %c0_190 = arith.constant 0 : index
    %c0_191 = arith.constant 0 : index
    %272 = vector.load %arg9[%c6_189, %c0_190, %c0_191] : memref<9x8x8xbf16, #tpu.memory_space<vmem>>, vector<1x8x8xbf16>
    %273 = vector.shape_cast %272 : vector<1x8x8xbf16> to vector<8x8xbf16>
    %cst_192 = arith.constant dense<0.000000e+00> : vector<64x8xf32>
    %274 = tpu.matmul %271, %273, %cst_192 {dimension_numbers = #tpu.dot_dimension_numbers<[1], [0], [0], [1], [0, 0, 1, 1], [], []>} : vector<64x8xbf16>, vector<8x8xbf16>, vector<64x8xf32> -> vector<64x8xf32>
    %275 = arith.addf %265, %274 : vector<64x8xf32>
    %c24_193 = arith.constant 24 : index
    %c0_194 = arith.constant 0 : index
    %276 = vector.load %arg13[%c24_193, %c0_194] : memref<96x8xbf16, #tpu.memory_space<vmem>>, vector<64x8xbf16>
    %c7_195 = arith.constant 7 : index
    %c0_196 = arith.constant 0 : index
    %c0_197 = arith.constant 0 : index
    %277 = vector.load %arg9[%c7_195, %c0_196, %c0_197] : memref<9x8x8xbf16, #tpu.memory_space<vmem>>, vector<1x8x8xbf16>
    %278 = vector.shape_cast %277 : vector<1x8x8xbf16> to vector<8x8xbf16>
    %cst_198 = arith.constant dense<0.000000e+00> : vector<64x8xf32>
    %279 = tpu.matmul %276, %278, %cst_198 {dimension_numbers = #tpu.dot_dimension_numbers<[1], [0], [0], [1], [0, 0, 1, 1], [], []>} : vector<64x8xbf16>, vector<8x8xbf16>, vector<64x8xf32> -> vector<64x8xf32>
    %280 = arith.addf %275, %279 : vector<64x8xf32>
    %c25_199 = arith.constant 25 : index
    %c0_200 = arith.constant 0 : index
    %281 = vector.load %arg13[%c25_199, %c0_200] : memref<96x8xbf16, #tpu.memory_space<vmem>>, vector<64x8xbf16>
    %c0_i32_201 = arith.constant 0 : i32
    %282 = arith.sitofp %c0_i32_201 : i32 to bf16
    %283 = vector.shape_cast %214 : vector<64x1xi1> to vector<64x1xi1>
    %284 = vector.broadcast %283 : vector<64x1xi1> to vector<64x8xi1>
    %285 = vector.broadcast %282 : bf16 to vector<64x8xbf16>
    %286 = arith.select %284, %281, %285 : vector<64x8xi1>, vector<64x8xbf16>
    %c8_202 = arith.constant 8 : index
    %c0_203 = arith.constant 0 : index
    %c0_204 = arith.constant 0 : index
    %287 = vector.load %arg9[%c8_202, %c0_203, %c0_204] : memref<9x8x8xbf16, #tpu.memory_space<vmem>>, vector<1x8x8xbf16>
    %288 = vector.shape_cast %287 : vector<1x8x8xbf16> to vector<8x8xbf16>
    %cst_205 = arith.constant dense<0.000000e+00> : vector<64x8xf32>
    %289 = tpu.matmul %286, %288, %cst_205 {dimension_numbers = #tpu.dot_dimension_numbers<[1], [0], [0], [1], [0, 0, 1, 1], [], []>} : vector<64x8xbf16>, vector<8x8xbf16>, vector<64x8xf32> -> vector<64x8xf32>
    %290 = arith.addf %280, %289 : vector<64x8xf32>
    %c0_206 = arith.constant 0 : index
    %c0_207 = arith.constant 0 : index
    %291 = vector.load %arg10[%c0_206, %c0_207] : memref<1x8xf32, #tpu.memory_space<vmem>>, vector<1x8xf32>
    %292 = vector.broadcast %291 : vector<1x8xf32> to vector<64x8xf32>
    %293 = arith.addf %290, %292 : vector<64x8xf32>
    %cst_208 = arith.constant 0.000000e+00 : f32
    %294 = vector.broadcast %cst_208 : f32 to vector<64x8xf32>
    %295 = arith.maximumf %293, %294 : vector<64x8xf32>
    %c0_209 = arith.constant 0 : index
    %c0_210 = arith.constant 0 : index
    %c0_211 = arith.constant 0 : index
    %296 = vector.load %arg11[%c0_209, %c0_210, %c0_211] : memref<1x64x8xf32, #tpu.memory_space<vmem>>, vector<1x64x8xf32>
    %297 = vector.shape_cast %296 : vector<1x64x8xf32> to vector<64x8xf32>
    %298 = vector.shape_cast %295 : vector<64x8xf32> to vector<1x64x8xf32>
    tpu.vector_store %arg11[%c0_209, %c0_210, %c0_211], %298 {strides = array<i32>} : memref<1x64x8xf32, #tpu.memory_space<vmem>>, vector<1x64x8xf32>,
    return
  }
  func.func @transform_0(%arg0: i32, %arg1: i32) -> (i32, i32, i32, i32, i32) {
    %c0_i32 = arith.constant 0 : i32
    %c0_i32_0 = arith.constant 0 : i32
    %c0_i32_1 = arith.constant 0 : i32
    %c0_i32_2 = arith.constant 0 : i32
    return %arg0, %arg1, %c0_i32, %c0_i32_0, %c0_i32_1 : i32, i32, i32, i32, i32
  }
  func.func @transform_1(%arg0: i32, %arg1: i32) -> (i32, i32, i32, i32, i32) {
    %c8_i32 = arith.constant 8 : i32
    %0 = arith.muli %arg1, %c8_i32 : i32
    %c2_i32 = arith.constant 2 : i32
    %1 = arith.subi %0, %c2_i32 : i32
    %c0_i32 = arith.constant 0 : i32
    %2 = arith.maxsi %1, %c0_i32 : i32
    %c0_i32_0 = arith.constant 0 : i32
    %c0_i32_1 = arith.constant 0 : i32
    %c0_i32_2 = arith.constant 0 : i32
    %c0_i32_3 = arith.constant 0 : i32
    return %arg0, %2, %c0_i32_0, %c0_i32_1, %c0_i32_2 : i32, i32, i32, i32, i32
  }
  func.func @transform_2(%arg0: i32, %arg1: i32) -> (i32, i32, i32, i32, i32) {
    %c8_i32 = arith.constant 8 : i32
    %0 = arith.muli %arg1, %c8_i32 : i32
    %c1_i32 = arith.constant 1 : i32
    %1 = arith.subi %0, %c1_i32 : i32
    %c0_i32 = arith.constant 0 : i32
    %2 = arith.maxsi %1, %c0_i32 : i32
    %c0_i32_0 = arith.constant 0 : i32
    %c0_i32_1 = arith.constant 0 : i32
    %c0_i32_2 = arith.constant 0 : i32
    %c0_i32_3 = arith.constant 0 : i32
    return %arg0, %2, %c0_i32_0, %c0_i32_1, %c0_i32_2 : i32, i32, i32, i32, i32
  }
  func.func @transform_3(%arg0: i32, %arg1: i32) -> (i32, i32, i32, i32, i32) {
    %c8_i32 = arith.constant 8 : i32
    %0 = arith.muli %arg1, %c8_i32 : i32
    %c8_i32_0 = arith.constant 8 : i32
    %1 = arith.addi %0, %c8_i32_0 : i32
    %c7_i32 = arith.constant 7 : i32
    %2 = arith.minsi %1, %c7_i32 : i32
    %c0_i32 = arith.constant 0 : i32
    %c0_i32_1 = arith.constant 0 : i32
    %c0_i32_2 = arith.constant 0 : i32
    %c0_i32_3 = arith.constant 0 : i32
    return %arg0, %2, %c0_i32, %c0_i32_1, %c0_i32_2 : i32, i32, i32, i32, i32
  }
  func.func @transform_4(%arg0: i32, %arg1: i32) -> (i32, i32, i32, i32, i32) {
    %c8_i32 = arith.constant 8 : i32
    %0 = arith.muli %arg1, %c8_i32 : i32
    %c8_i32_0 = arith.constant 8 : i32
    %1 = arith.addi %0, %c8_i32_0 : i32
    %c1_i32 = arith.constant 1 : i32
    %2 = arith.addi %1, %c1_i32 : i32
    %c7_i32 = arith.constant 7 : i32
    %3 = arith.minsi %2, %c7_i32 : i32
    %c0_i32 = arith.constant 0 : i32
    %c0_i32_1 = arith.constant 0 : i32
    %c0_i32_2 = arith.constant 0 : i32
    %c0_i32_3 = arith.constant 0 : i32
    return %arg0, %3, %c0_i32, %c0_i32_1, %c0_i32_2 : i32, i32, i32, i32, i32
  }
  func.func @transform_5(%arg0: i32, %arg1: i32) -> (i32, i32, i32) {
    %c0_i32 = arith.constant 0 : i32
    %c0_i32_0 = arith.constant 0 : i32
    %c0_i32_1 = arith.constant 0 : i32
    %c0_i32_2 = arith.constant 0 : i32
    return %c0_i32, %c0_i32_0, %c0_i32_1 : i32, i32, i32
  }
  func.func @transform_6(%arg0: i32, %arg1: i32) -> (i32, i32) {
    %c0_i32 = arith.constant 0 : i32
    %c0_i32_0 = arith.constant 0 : i32
    %c0_i32_1 = arith.constant 0 : i32
    return %c0_i32, %c0_i32_0 : i32, i32
  }
  func.func @transform_7(%arg0: i32, %arg1: i32) -> (i32, i32, i32) {
    %c0_i32 = arith.constant 0 : i32
    %c0_i32_0 = arith.constant 0 : i32
    %c0_i32_1 = arith.constant 0 : i32
    %c0_i32_2 = arith.constant 0 : i32
    return %c0_i32, %c0_i32_0, %c0_i32_1 : i32, i32, i32
  }
  func.func @transform_8(%arg0: i32, %arg1: i32) -> (i32, i32) {
    %c0_i32 = arith.constant 0 : i32
    %c0_i32_0 = arith.constant 0 : i32
    %c0_i32_1 = arith.constant 0 : i32
    return %c0_i32, %c0_i32_0 : i32, i32
  }
  func.func @transform_9(%arg0: i32, %arg1: i32) -> (i32, i32, i32) {
    %c0_i32 = arith.constant 0 : i32
    %c0_i32_0 = arith.constant 0 : i32
    return %arg0, %arg1, %c0_i32 : i32, i32, i32
  }
}

</mosaic_0001>

<bundles_post_ra>
// kernel: down_forward.1
= control target key start
LH: loop header
LB: loop body
LE: loop exit
PB: predicated region body
PF: predicated region fallthrough
CT: control target
= control target key end

     0   :  { %s4702_s28 = smov 0   ;;  %s4704_s3 = smov 0   ;;  %s6035_s0 = inlined_call_operand.vmem [shape: bf16[2,8,2,8,8], index: 0, kind: input, shape index: {}, may-alias: {0,1,2,3,4}]   ;;  %s6036_s1 = inlined_call_operand.vmem [shape: bf16[2,8,2,8,8], index: 1, kind: input, shape index: {}, may-alias: {0,1,2,3,4}]   ;;  %s6037_s2 = inlined_call_operand.vmem [shape: bf16[2,8,2,8,8], index: 2, kind: input, shape index: {}, may-alias: {0,1,2,3,4}]   ;;  %s6038_s3 = inlined_call_operand.vmem [shape: bf16[2,8,2,8,8], index: 3, kind: input, shape index: {}, may-alias: {0,1,2,3,4}]   ;;  %s6039_s4 = inlined_call_operand.vmem [shape: bf16[2,8,2,8,8], index: 4, kind: input, shape index: {}, may-alias: {0,1,2,3,4}]   ;;  %s6040_s5 = inlined_call_operand.vmem [shape: bf16[9,4,8], index: 5, kind: input, shape index: {}]   ;;  %s6041_s6 = inlined_call_operand.vmem [shape: f32[1,8], index: 6, kind: input, shape index: {}]   ;;  %s6042_s7 = inlined_call_operand.vmem [shape: bf16[9,8,8], index: 7, kind: input, shape index: {}]   ;;  %s6043_s8 = inlined_call_operand.vmem [shape: f32[1,8], index: 8, kind: input, shape index: {}]   ;;  %s6044_s9 = inlined_call_operand.vmem [shape: f32[2,64,8], index: 9, kind: output, shape index: {}]  }
   0x1   :  { %s4706_s4 = smov 0  }
   0x2 LB: > { %s31_s29 = sadd.s32 1, %s4642_s3  ;;  %p3981_p0 = scmp.ge.s32.totalorder %s4646_s4, 1  ;;  %s4646_s4 = sphi %s4706_s4, %s19_s4   ;;  %s4642_s3 = sphi %s4704_s3, %s6124_s3   ;;  %s4638_s28 = sphi %s4702_s28, %s6123_s28  }
   0x3   : > { %p33_p1 = scmp.ge.s32.totalorder %s31_s29, 2  ;;  %p437_p2 = scmp.lt.s32.totalorder %s4646_s4, 3 }
   0x5   : > { %s6126_s29 = smov (%p33_p1, %s31_s29), 0  ;;  %p438_p3 = pnand %p3981_p0, %p437_p2 }
   0x6   : > { %p535_p4 = scmp.lt.s32.totalorder (!%p438_p3), %s4638_s28, 1  ;;  %vm694_vm0 = vcmask (!%p438_p3), 31748   ;;  %vm692_vm1 = vcmask (!%p438_p3), 27648   ;;  %v6048_v0 = vmov (!%p438_p3), 0   ;;  %s4649_s13 = smov (!%p438_p3), 124   ;;  %vm1106_vm2 = vcmask (!%p438_p3), 1041408  }
   0x7   : > { %441 = sbr.rel (%p438_p3) target bundleno = 972 (0x3cc), region = 56  ;;  %695 = vst.msk [vmem:[#allocation2 + $0x30] sm:$0xf0] (!%p438_p3), %vm694_vm0, %v6048_v0  ;;  %v4003_v1 = vcombine.low (!%p438_p3), %v6048_v0, %v6048_v0  ;;  %v4018_v18 = vld [vmem:[%s6040_s5 + $0x2] sm:$0x3] (!%p438_p3)  ;;  %v4650_v19 = vmov (!%p438_p3), 0.0   ;;  %v800_v31 = vlaneseq (!%p438_p3) }
   0x8   : > { %731 = vst.msk [vmem:[#allocation2 + $0x8] sm:$0xf] (!%p438_p3), %vm692_vm1, %v6048_v0  ;;  %693 = vst.msk [vmem:[#allocation2] sm:$0xf] (!%p438_p3), %vm692_vm1, %v6048_v0  ;;  %4233 = vmatprep.subr.bf16.mxu0 (!%p438_p3), %v4650_v19  ;;  %v1108_v20 = vsel (!%p438_p3), %vm1106_vm2, %v4018_v18, 0  ;;  %4521 = vmatprep.subr.bf16.mxu1 (!%p438_p3), %v4650_v19  ;;  %vm4651_vm3 = vmmov (!%p438_p3), 0  }
   0x9   : > { %767 = vst.msk [vmem:[#allocation2 + $0x30] sm:$0xf] (!%p438_p3), %vm692_vm1, %v6048_v0  ;;  %4234 = vmatpush3.bf16.msra.mxu0 (!%p438_p3), %v1108_v20  ;;  %4235 = vmatprep.mubr.msk.bf16.mxu0 (!%p438_p3), %vm4651_vm3, %v4650_v19  ;;  %v4040_v27 = vld [vmem:[%s6040_s5 + $0x6] sm:$0x3] (!%p438_p3)  ;;  %v4809_v32 = vshrl.u32 (!%p438_p3), %v800_v31, 7 }
   0xa   : > { %715 = vst.msk [vmem:[#allocation2] sm:$0xf0] (!%p438_p3), %vm694_vm0, %v4003_v1  ;;  %751 = vst.msk [vmem:[#allocation2 + $0x28] sm:$0xf0] (!%p438_p3), %vm694_vm0, %v4003_v1  ;;  %4255 = vmatprep.subr.bf16.mxu0 (!%p438_p3), %v4650_v19  ;;  %4305 = vmatprep.mubr.msk.bf16.mxu1 (!%p438_p3), %vm4651_vm3, %v4650_v19  ;;  %v4793_v28 = vsel (!%p438_p3), %vm1106_vm2, %v4040_v27, 0 }
   0xb   : > { %4522 = vmatpush3.bf16.msra.mxu1 (!%p438_p3), %v4793_v28  ;;  %v4812_v33 = vadd.s32 (!%p438_p3), 8, %v4809_v32  ;;  %v815_v34 = vand.u32 (!%p438_p3), 7, %v4809_v32  ;;  %v4817_v36 = vadd.s32 (!%p438_p3), 16, %v4809_v32  ;;  %v4820_v37 = vadd.s32 (!%p438_p3), 24, %v4809_v32 }
   0xc   : > { %4343 = vmatprep.subr.bf16.mxu1 (!%p438_p3), %v4650_v19  ;;  %v4825_v38 = vadd.s32 (!%p438_p3), 32, %v4809_v32  ;;  %v4831_v40 = vadd.s32 (!%p438_p3), 40, %v4809_v32  ;;  %v4836_v43 = vadd.s32 (!%p438_p3), 48, %v4809_v32  ;;  %v4846_v46 = vadd.s32 (!%p438_p3), 56, %v4809_v32 }
   0xd   : > { %v822_v35 = vand.u32 (!%p438_p3), 7, %v4812_v33  ;;  %vm931_vm4 = vcmp.ne.s32.totalorder (!%p438_p3), %v815_v34, 0  ;;  %v829_v39 = vand.u32 (!%p438_p3), 7, %v4817_v36  ;;  %v836_v41 = vand.u32 (!%p438_p3), 7, %v4820_v37 }
   0xe   : > { %s6128_s28 = smov (!%p535_p4, %s4638_s28), 1  ;;  %vm977_vm6 = vmpackc.low %vm931_vm4, %vm931_vm4  ;;  %v843_v42 = vand.u32 7, %v4825_v38  ;;  %v850_v44 = vand.u32 7, %v4831_v40  ;;  %v4857_v50 = vadd.s32 64, %v4809_v32  ;;  %v857_v52 = vand.u32 7, %v4836_v43 }
   0xf   : > { %s4124_s30 = sshll.u32 %s6128_s28, 6  ;;  %vm932_vm5 = vcmp.ne.s32.totalorder %v822_v35, 0  ;;  %vm4841_vm8 = vcmp.ne.s32.totalorder %v829_v39, 0  ;;  %vm4850_vm9 = vcmp.ne.s32.totalorder %v836_v41, 0  ;;  %v987_v48 = vsel %vm977_vm6, 65537, %v6048_v0 }
  0x10   : > { %s4740_s12 = scalar_lea.vmem %s6035_s0, %s4124_s30  ;;  %vm978_vm7 = vmpackc.low %vm932_vm5, %vm932_vm5  ;;  %vm4861_vm10 = vcmp.ne.s32.totalorder %v843_v42, 0  ;;  %v4870_v53 = vadd.s32 72, %v4809_v32  ;;  %vm936_vm12 = vcmp.ne.s32.totalorder %v850_v44, 0  ;;  %v864_v55 = vand.u32 7, %v4846_v46  ;;  %s621_s16 = scalar_lea.vmem %s6044_s9, %s4124_s30 }
  0x11   : > { %v627_v2 = vld [vmem:[%s4740_s12] sm:$0xf]  ;;  %v3994_v3 = vld [vmem:[%s4740_s12 + $0x4] sm:$0xf]  ;;  %v629_v4 = vld [vmem:[%s4740_s12 + $0x10] sm:$0xf] }
  0x12   : > { %v4745_v5 = vmax.bf16 %v3994_v3, %v627_v2  ;;  %v3996_v6 = vld [vmem:[%s4740_s12 + $0x14] sm:$0xf]  ;;  %v628_v7 = vld [vmem:[%s4740_s12 + $0x8] sm:$0xf]  ;;  %v3995_v8 = vld [vmem:[%s4740_s12 + $0xc] sm:$0xf] }
  0x13   : > { %v4750_v9 = vmax.bf16 %v3996_v6, %v629_v4  ;;  %v630_v10 = vld [vmem:[%s4740_s12 + $0x18] sm:$0xf]  ;;  %v3997_v11 = vld [vmem:[%s4740_s12 + $0x1c] sm:$0xf]  ;;  %v4756_v12 = vmax.bf16 %v3995_v8, %v628_v7  ;;  %v631_v14 = vld [vmem:[%s4740_s12 + $0x20] sm:$0xf] }
  0x14   : > { %660 = vrot.lane.b32.xlu0 %v4745_v5, %s4649_s13  ;;  %v4760_v13 = vmax.bf16 %v3997_v11, %v630_v10  ;;  %v3998_v15 = vld [vmem:[%s4740_s12 + $0x24] sm:$0xf]  ;;  %v632_v16 = vld [vmem:[%s4740_s12 + $0x28] sm:$0xf]  ;;  %v3999_v17 = vld [vmem:[%s4740_s12 + $0x2c] sm:$0xf] }
  0x15   : > { %664 = vrot.lane.b32.xlu1 %v4750_v9, %s4649_s13  ;;  %v4774_v21 = vmax.bf16 %v3998_v15, %v631_v14  ;;  %v4778_v22 = vmax.bf16 %v3999_v17, %v632_v16  ;;  %v633_v23 = vld [vmem:[%s4740_s12 + $0x30] sm:$0xf]  ;;  %v4000_v24 = vld [vmem:[%s4740_s12 + $0x34] sm:$0xf]  ;;  %v634_v25 = vld [vmem:[%s4740_s12 + $0x38] sm:$0xf] }
  0x16   : > { %v4001_v26 = vld [vmem:[%s4740_s12 + $0x3c] sm:$0xf]  ;;  %v4797_v29 = vmax.bf16 %v4000_v24, %v633_v23  ;;  %v988_v49 = vsel %vm978_vm7, 65537, %v6048_v0  ;;  %vm979_vm11 = vmpackc.low %vm4841_vm8, %vm4841_vm8  ;;  %v871_v56 = vand.u32 7, %v4857_v50  ;;  %vm4888_vm4 = vcmp.ne.s32.totalorder %v857_v52, 0 }
  0x17   : > { %v4802_v30 = vmax.bf16 %v4001_v26, %v634_v25  ;;  %vm980_vm13 = vmpackc.low %vm4850_vm9, %vm4850_vm9  ;;  %v4877_v54 = vcombine.low %v987_v48, %v988_v49  ;;  %v989_v57 = vsel %vm979_vm11, 65537, %v6048_v0  ;;  %v878_v60 = vand.u32 7, %v4870_v53  ;;  %v4962_v49 = vld [vmem:[#allocation2] sm:$0xf0] }
  0x18   : > { %662 = vrot.lane.b32.xlu0 %v4756_v12, %s4649_s13  ;;  %vm981_vm14 = vmpackc.low %vm4861_vm10, %vm4861_vm10  ;;  %v990_v58 = vsel %vm980_vm13, 65537, %v6048_v0  ;;  %vm4896_vm5 = vcmp.ne.s32.totalorder %v864_v55, 0  ;;  %vm4909_vm7 = vcmp.ne.s32.totalorder %v871_v56, 0  ;;  %vm795_vm13 = vcmask 31744  }
  0x19   : > { %666 = vrot.lane.b32.xlu1 %v4760_v13, %s4649_s13  ;;  %vm982_vm15 = vmpackc.low %vm936_vm12, %vm936_vm12  ;;  %v1017_v61 = vshll.u32 %v4877_v54, 16  ;;  %v991_v63 = vsel %vm981_vm14, 65537, %v6048_v0  ;;  %v4902_v2 = vcombine.low %v989_v57, %v990_v58  ;;  %vm4918_vm9 = vcmp.ne.s32.totalorder %v878_v60, 0 }
  0x1a   : > { %v992_v1 = vsel %vm982_vm15, 65537, %v6048_v0  ;;  %vm983_vm6 = vmpackc.low %vm4888_vm4, %vm4888_vm4  ;;  %v1014_v10 = vshrl.u32 %v4877_v54, 16  ;;  %vm6060_vm12 = vsmask.f32 7424  ;;  %vm4958_vm14 = vcmp.ne.s32.totalorder %v815_v34, 7 }
  0x1b   : > { %vm984_vm8 = vmpackc.low %vm4896_vm5, %vm4896_vm5  ;;  %v4924_v6 = vrot.slane %v1017_v61, 1  ;;  %v4926_v8 = vcombine.low %v991_v63, %v992_v1  ;;  %v1025_v15 = vshll.u32 %v4902_v2, 16  ;;  %v993_v16 = vsel %vm983_vm6, 65537, %v6048_v0 }
  0x1c   : > { %668 = vrot.lane.b32.xlu0 %v4774_v21, %s4649_s13  ;;  %vm985_vm10 = vmpackc.low %vm4909_vm7, %vm4909_vm7  ;;  %v994_v17 = vsel %vm984_vm8, 65537, %v6048_v0  ;;  %v1022_v18 = vshrl.u32 %v4902_v2, 16  ;;  %vm4980_vm15 = vcmp.ne.s32.totalorder %v822_v35, 7  ;;  %vm4986_vm4 = vcmp.ne.s32.totalorder %v829_v39, 7 }
  0x1d   : > { %670 = vrot.lane.b32.xlu1 %v4778_v22, %s4649_s13  ;;  %vm986_vm11 = vmpackc.low %vm4918_vm9, %vm4918_vm9  ;;  %v1600_v24 = vor.u32 %v4924_v6, %v1014_v10  ;;  %v1034_v26 = vshll.u32 %v4926_v8, 16  ;;  %v4945_v27 = vcombine.low %v993_v16, %v994_v17  ;;  %v995_v31 = vsel %vm985_vm10, 65537, %v6048_v0 }
  0x1e   : > { %v996_v45 = vsel %vm986_vm11, 65537, %v6048_v0  ;;  %v1031_v34 = vshrl.u32 %v4926_v8, 16  ;;  %vm1349_vm5 = vmpackc.low %vm4958_vm14, %vm4958_vm14  ;;  %vm4999_vm6 = vcmp.ne.s32.totalorder %v836_v41, 7 }
  0x1f   : > { %v1604_v57 = vrot.slane %v1034_v26, 1  ;;  %v4972_v62 = vcombine.low %v995_v31, %v996_v45  ;;  %v1043_v63 = vshll.u32 %v4945_v27, 16  ;;  %vm1350_vm8 = vmpackc.low %vm4980_vm15, %vm4980_vm15  ;;  %v1359_v17 = vsel %vm1349_vm5, 65537, %v6048_v0 }
  0x20   : > { %672 = vrot.lane.b32.xlu0 %v4797_v29, %s4649_s13  ;;  %vm1351_vm9 = vmpackc.low %vm4986_vm4, %vm4986_vm4  ;;  %vm5109_vm5 = vcmp.ne.s32.totalorder %v843_v42, 7 }
  0x21   : > { %674 = vrot.lane.b32.xlu1 %v4802_v30, %s4649_s13  ;;  %v1606_v35 = vor.u32 %v1604_v57, %v1031_v34  ;;  %v1607_v36 = vrot.slane %v1043_v63, 1  ;;  %v1052_v37 = vshll.u32 %v4972_v62, 16  ;;  %vm1352_vm10 = vmpackc.low %vm4999_vm6, %vm4999_vm6  ;;  %vm5121_vm6 = vcmp.ne.s32.totalorder %v850_v44, 7 }
  0x22   : > { %v1045_v50 = vrot.slane %v1043_v63, 5 }
  0x23   : > { %v1610_v48 = vrot.slane %v1052_v37, 1 }
  0x86   : > { %v661_v7 = vpop.permute.xlu0 %660 }
  0x87   : > { %v684_v11 = vmax.bf16 %v661_v7, %v4745_v5  ;;  %v665_v14 = vpop.permute.xlu1 %664  ;;  %v1601_v5 = vrot.slane %v1025_v15, 1  ;;  %v1080_v7 = vrot.slane %v4962_v49, 4 }
  0x88   : > { %v686_v23 = vmax.bf16 %v665_v14, %v4750_v9 }
  0x89   : > { %v4008_v20 = vcombine.low %v684_v11, %v684_v11  ;;  %v1603_v51 = vor.u32 %v1601_v5, %v1022_v18 }
  0x8a   : > { %v663_v25 = vpop.permute.xlu0 %662 }
  0x8b   : > { %794 = vst.msk [vmem:[#allocation2 + $0x8] sm:$0xf0] %vm694_vm0, %v4008_v20  ;;  %v685_v9 = vmax.bf16 %v663_v25, %v4756_v12  ;;  %v667_v47 = vpop.permute.xlu1 %666  ;;  %v4970_v12 = vsel %vm6060_vm12, %v1600_v24, %v1601_v5  ;;  %vm1079_vm0 = vcmask 1043456   ;;  %v5010_v14 = vsel %vm6060_vm12, %v1603_v51, %v1604_v57 }
  0x8c   : > { %v687_v59 = vmax.bf16 %v667_v47, %v4760_v13  ;;  %vm6061_vm7 = vcmp.ne.s16.totalorder %v4970_v12, 0  ;;  %vm6046_vm11 = vcmp.ne.s16.totalorder %v5010_v14, 0 }
  0x8d   : > { %v4009_v58 = vcombine.low %v685_v9, %v686_v23  ;;  %v1016_v23 = vrot.slane %v1014_v10, 4  ;;  %v1040_v10 = vshrl.u32 %v4945_v27, 16 }
  0x8e   : > { %v669_v32 = vpop.permute.xlu0 %668 }
  0x8f   : > { %796 = vst.msk [vmem:[#allocation2 + $0x10] sm:$0xff] %vm795_vm13, %v4009_v58  ;;  %v688_v1 = vmax.bf16 %v669_v32, %v4774_v21  ;;  %v671_v3 = vpop.permute.xlu1 %670  ;;  %v1069_v21 = vld [vmem:[%s6040_s5] sm:$0x3]  ;;  %v5043_v47 = vor.u32 %v1607_v36, %v1040_v10  ;;  %v1361_v32 = vsel %vm1351_vm9, 65537, %v6048_v0  ;;  %vm1354_vm9 = vmpackc.low %vm5121_vm6, %vm5121_vm6  ;;  %v1042_v63 = vrot.slane %v1040_v10, 4 }
  0x90   : > { %v689_v11 = vmax.bf16 %v671_v3, %v4778_v22  ;;  %v1253_v20 = vsel %vm1106_vm2, %v1069_v21, 0  ;;  %v1019_v22 = vrot.slane %v1017_v61, 5  ;;  %v5038_v61 = vsel %vm6060_vm12, %v1606_v35, %v1607_v36 }
  0x91   : > { %v4010_v39 = vcombine.low %v687_v59, %v688_v1  ;;  %v1362_v1 = vsel %vm1352_vm10, 65537, %v6048_v0  ;;  %vm6045_vm14 = vcmp.ne.s16.totalorder %v5038_v61, 0  ;;  %v1611_v35 = vsel %vm6060_vm12, %v5043_v47, %v1610_v48 }
  0x92   : > { %v673_v41 = vpop.permute.xlu0 %672  ;;  %v5013_v16 = vld [vmem:[#allocation2 + $0x8] sm:$0xff]  ;;  %v5071_v3 = vor.u32 %v1019_v22, %v1016_v23  ;;  %v1024_v23 = vrot.slane %v1022_v18, 4  ;;  %v1027_v22 = vrot.slane %v1025_v15, 5  ;;  %vm1617_vm15 = vcmp.ne.s16.totalorder %v1611_v35, 0 }
  0x93   : > { %797 = vst.msk [vmem:[#allocation2 + $0x18] sm:$0xff] %vm795_vm13, %v4010_v39  ;;  %v690_v24 = vmax.bf16 %v673_v41, %v4797_v29  ;;  %v1081_v5 = vrot.slane %v5013_v16, 4  ;;  %v675_v25 = vpop.permute.xlu1 %674  ;;  %v1620_v31 = vsel %vm6061_vm7, %v5013_v16, 0  ;;  %v5088_v39 = vcombine.low %v1361_v32, %v1362_v1 }
  0x94   : > { %v691_v54 = vmax.bf16 %v675_v25, %v4802_v30  ;;  %v1633_v29 = vshrl.u32 %v1620_v31, 16  ;;  %v1360_v30 = vsel %vm1350_vm8, 65537, %v6048_v0  ;;  %v1636_v59 = vshll.u32 %v1620_v31, 16  ;;  %vm1353_vm8 = vmpackc.low %vm5109_vm5, %vm5109_vm5 }
  0x95   : > { %v4011_v45 = vcombine.low %v689_v11, %v690_v24  ;;  %v1082_v9 = vsel %vm1079_vm0, %v1080_v7, %v1081_v5  ;;  %v5086_v36 = vcombine.low %v1359_v17, %v1360_v30  ;;  %vm1057_vm4 = vcmp.ne.s16.totalorder %v5071_v3, 0 }
  0x96   : > { %4236 = vmatmul.mubr.msk.bf16.vlgmr.msra.gmra.mrb[0].mxu0 %vm795_vm13, %v1082_v9  ;;  %v4012_v51 = vcombine.low %v691_v54, %v691_v54  ;;  %v5054_v57 = vld [vmem:[#allocation2 + $0x10] sm:$0xff]  ;;  %v1635_v58 = vrot.slane %v1633_v29, 7  ;;  %v1049_v54 = vshrl.u32 %v4972_v62, 16  ;;  %v951_v29 = vld [vmem:[#allocation2] sm:$0xf8]  ;;  %v1363_v43 = vsel %vm1353_vm8, 65537, %v6048_v0 }
  0x97   : > { %798 = vst.msk [vmem:[#allocation2 + $0x20] sm:$0xff] %vm795_vm13, %v4011_v45  ;;  %4256 = vmatpush3.bf16.msra.mxu0 %v1253_v20  ;;  %4239 = vmatprep.mubr.msk.bf16.mxu0 %vm4651_vm3, %v4650_v19  ;;  %v1621_v13 = vsel %vm6046_vm11, %v5054_v57, 0  ;;  %v5082_v33 = vrot.slane %v5054_v57, 4  ;;  %v4052_v20 = vld [vmem:[%s6040_s5 + $0xa] sm:$0x3]  ;;  %v1063_v40 = vsel %vm1057_vm4, %v951_v29, 0 }
  0x98   : > { %799 = vst.msk [vmem:[#allocation2 + $0x28] sm:$0xf] %vm692_vm1, %v4012_v51  ;;  %v5077_v4 = vor.u32 %v1636_v59, %v1635_v58  ;;  %v1641_v7 = vshrl.u32 %v1621_v13, 16  ;;  %v1644_v21 = vshll.u32 %v1621_v13, 16  ;;  %4277 = vmatprep.subr.bf16.mxu0 %v4650_v19  ;;  %vm1627_vm1 = vsmask.f32 256 }
  0x99   : > { %v1084_v31 = vsel %vm1079_vm0, %v1081_v5, %v5082_v33  ;;  %v1970_v18 = vsel %vm1106_vm2, %v4052_v20, 0  ;;  %v1612_v42 = vor.u32 %v1610_v48, %v1049_v54  ;;  %v1385_v44 = vshrl.u32 %v5086_v36, 16 }
  0x9a   : > { %v1643_v11 = vrot.slane %v1641_v7, 7  ;;  %v5090_v41 = vld [vmem:[#allocation2 + $0x18] sm:$0xff]  ;;  %v6058_v51 = vshrl.u32 %v5088_v39, 16  ;;  %vm1012_vm10 = vsmask.f32 3328  ;;  %v6055_v13 = vshll.u32 %v5088_v39, 16 }
  0x9b   : > { %v1622_v17 = vsel %vm6045_vm14, %v5090_v41, 0  ;;  %v1085_v59 = vrot.slane %v5090_v41, 4  ;;  %v1185_v7 = vshrl.u32 %v1063_v40, 16  ;;  %vm5157_vm14 = vcmp.ne.s32.totalorder %v864_v55, 7 }
  0x9c   : > { %v1646_v24 = vor.u32 %v1644_v21, %v1643_v11  ;;  %v1649_v25 = vshrl.u32 %v1622_v17, 16  ;;  %v1652_v9 = vshll.u32 %v1622_v17, 16  ;;  %vm1618_vm6 = vcmp.ne.s16.totalorder %v1612_v42, 0  ;;  %vm1356_vm8 = vmpackc.low %vm5157_vm14, %vm5157_vm14 }
  0x9d   : > { %v5165_v20 = vrot.slane %v6058_v51, 7  ;;  %v1364_v46 = vsel %vm1354_vm9, 65537, %v6048_v0  ;;  %v5178_v55 = vsel %vm1079_vm0, %v5082_v33, %v1085_v59  ;;  %v1366_v5 = vsel %vm1356_vm8, 65537, %v6048_v0 }
  0x9e   : > { %4240 = vmatmul.mubr.msk.bf16.gmra.mrb[4].mxu0 %vm795_vm13, %v1084_v31  ;;  %v1647_v15 = vsel %vm1627_vm1, %v1635_v58, %v1646_v24  ;;  %v5115_v45 = vrot.slane %v1649_v25, 7  ;;  %v5117_v30 = vld [vmem:[#allocation2 + $0x20] sm:$0xff]  ;;  %v5140_v58 = vor.u32 %v1027_v22, %v1024_v23  ;;  %v1882_v22 = vrot.slane %v1385_v44, 7 }
  0x9f   : > { %4306 = vmatmul.mubr.msk.bf16.vlgmr.msra.gmra.mrb[0].mxu1 %vm795_vm13, %v1647_v15  ;;  %4243 = vmatprep.mubr.msk.bf16.mxu0 %vm4651_vm3, %v4650_v19  ;;  %v1623_v38 = vsel %vm1617_vm15, %v5117_v30, 0  ;;  %vm5150_vm15 = vcmp.ne.s32.totalorder %v857_v52, 7  ;;  %v5161_v35 = vld [vmem:[#allocation2 + $0x28] sm:$0xff]  ;;  %v1036_v52 = vrot.slane %v1034_v26, 5  ;;  %v1033_v26 = vrot.slane %v1031_v34, 4 }
  0xa0   : > { %4309 = vmatprep.mubr.msk.bf16.mxu1 %vm4651_vm3, %v4650_v19  ;;  %4344 = vmatpush3.bf16.msra.mxu1 %v1970_v18  ;;  %v1654_v48 = vor.u32 %v1652_v9, %v5115_v45  ;;  %v1657_v32 = vshrl.u32 %v1623_v38, 16  ;;  %v5183_v23 = vsel %vm1012_vm10, %v5071_v3, %v5140_v58  ;;  %vm1355_vm5 = vmpackc.low %vm5150_vm15, %vm5150_vm15  ;;  %v1660_v25 = vshll.u32 %v1623_v38, 16 }
  0xa1   : > { %4387 = vmatprep.subr.bf16.mxu1 %v4650_v19  ;;  %v1388_v31 = vshll.u32 %v5086_v36, 16  ;;  %v1624_v8 = vsel %vm1618_vm6, %v5161_v35, 0  ;;  %v5206_v34 = vcombine.low %v1363_v43, %v1364_v46  ;;  %vm1058_vm9 = vcmp.ne.s16.totalorder %v5183_v23, 0 }
  0xa2   : > { %v1655_v17 = vsel %vm1627_vm1, %v1643_v11, %v1654_v48  ;;  %v5195_v24 = vrot.slane %v1657_v32, 7  ;;  %v5211_v11 = vrot.slane %v1185_v7, 3  ;;  %v1188_v18 = vshll.u32 %v1063_v40, 16 }
  0xa3   : > { %v1885_v29 = vor.u32 %v5165_v20, %v6055_v13  ;;  %v5217_v2 = vrot.slane %v5117_v30, 4  ;;  %v5221_v15 = vor.u32 %v1882_v22, %v1388_v31  ;;  %v1365_v9 = vsel %vm1355_vm5, 65537, %v6048_v0 }
  0xa4   : > { %v1662_v38 = vor.u32 %v1660_v25, %v5195_v24  ;;  %v1665_v42 = vshrl.u32 %v1624_v8, 16  ;;  %v5231_v40 = vor.u32 %v1036_v52, %v1033_v26  ;;  %vm5235_vm14 = vcmp.ne.s32.totalorder %v871_v56, 7 }
  0xa5   : > { %v1051_v32 = vrot.slane %v1049_v54, 4  ;;  %v1054_v1 = vrot.slane %v1052_v37, 5  ;;  %v6054_v7 = vshrl.u32 %v5206_v34, 16  ;;  %vm5246_vm15 = vcmp.ne.s32.totalorder %v878_v60, 7  ;;  %vm1357_vm5 = vmpackc.low %vm5235_vm14, %vm5235_vm14 }
  0xa6   : > { %4244 = vmatmul.mubr.msk.bf16.gmra.mrb[8].mxu0 %vm795_vm13, %v5178_v55  ;;  %v5252_v56 = vrot.slane %v1188_v18, 4  ;;  %v5255_v43 = vsel %vm1627_vm1, %v1882_v22, %v1885_v29  ;;  %v5257_v54 = vcombine.low %v1365_v9, %v1366_v5  ;;  %v5261_v62 = vsel %vm1079_vm0, %v1085_v59, %v5217_v2  ;;  %v5280_v59 = vld [vmem:[#allocation2 + $0x28] sm:$0xf]  ;;  %vm1358_vm8 = vmpackc.low %vm5246_vm15, %vm5246_vm15  ;;  %v5314_v9 = vld [vmem:[#allocation2 + $0x30] sm:$0xf] }
  0xa7   : > { %4310 = vmatmul.mubr.msk.bf16.gmra.mrb[4].mxu1 %vm795_vm13, %v1655_v17  ;;  %4247 = vmatprep.mubr.msk.bf16.mxu0 %vm4651_vm3, %v4650_v19  ;;  %v1064_v53 = vsel %vm1058_vm9, %v5013_v16, 0  ;;  %vm6047_vm6 = vcmp.ne.s16.totalorder %v5221_v15, 0  ;;  %v5269_v60 = vrot.slane %v6054_v7, 7  ;;  %v1663_v37 = vsel %vm1627_vm1, %v5115_v45, %v1662_v38 }
  0xa8   : > { %4313 = vmatprep.mubr.msk.bf16.mxu1 %vm4651_vm3, %v4650_v19  ;;  %v1667_v46 = vrot.slane %v1665_v42, 7  ;;  %v1668_v52 = vshll.u32 %v1624_v8, 16  ;;  %v5288_v22 = vor.u32 %v1054_v1, %v1051_v32  ;;  %vm6052_vm11 = vcmp.ne.s16.totalorder %v5255_v43, 0 }
  0xa9   : > { %v5294_v27 = vsel %vm1012_vm10, %v5140_v58, %v5231_v40  ;;  %v6053_v10 = vshll.u32 %v5206_v34, 16  ;;  %v1193_v45 = vshrl.u32 %v1064_v53, 16  ;;  %v1196_v26 = vshll.u32 %v1064_v53, 16 }
  0xaa   : > { %v1902_v17 = vsel %vm6047_vm6, %v5013_v16, 0  ;;  %v6050_v25 = vshrl.u32 %v5257_v54, 16  ;;  %v1089_v8 = vrot.slane %v5280_v59, 4  ;;  %v1367_v18 = vsel %vm1357_vm5, 65537, %v6048_v0 }
  0xab   : > { %v1888_v58 = vor.u32 %v5269_v60, %v6053_v10  ;;  %v1368_v29 = vsel %vm1358_vm8, 65537, %v6048_v0  ;;  %v1670_v5 = vor.u32 %v1668_v52, %v1667_v46  ;;  %v5319_v38 = vsel %vm6052_vm11, %v5054_v57, 0 }
  0xac   : > { %vm1059_vm15 = vcmp.ne.s16.totalorder %v5294_v27, 0  ;;  %v5324_v42 = vrot.slane %v6050_v25, 7  ;;  %vm1062_vm6 = vcmp.ne.s16.totalorder %v5288_v22, 0  ;;  %v1913_v48 = vshll.u32 %v1902_v17, 16 }
  0xad   : > { %v5327_v32 = vor.u32 %v1045_v50, %v1042_v63  ;;  %v6051_v1 = vshll.u32 %v5257_v54, 16  ;;  %v1195_v21 = vrot.slane %v1193_v45, 3  ;;  %v1198_v53 = vrot.slane %v1196_v26, 4 }
  0xae   : > { %4248 = vmatmul.mubr.msk.bf16.gmra.mrb[12].mxu0 %vm795_vm13, %v5261_v62  ;;  %v2062_v46 = vsel %vm1062_vm6, %v5314_v9, 0  ;;  %v1090_v52 = vsel %vm1079_vm0, %v5217_v2, %v1089_v8  ;;  %v1918_v0 = vshll.u32 %v5319_v38, 16  ;;  %v1065_v50 = vsel %vm1059_vm15, %v5054_v57, 0 }
  0xaf   : > { %4314 = vmatmul.mubr.msk.bf16.gmra.mrb[8].mxu1 %vm795_vm13, %v1663_v37  ;;  %4251 = vmatprep.mubr.msk.bf16.mxu0 %vm4651_vm3, %v4650_v19  ;;  %v5330_v37 = vcombine.low %v1367_v18, %v1368_v29  ;;  %v5343_v63 = vsel %vm1627_vm1, %v5165_v20, %v1888_v58  ;;  %vm1183_vm14 = vsmask.f32 4352  ;;  %v1671_v45 = vsel %vm1627_vm1, %v5195_v24, %v1670_v5  ;;  %v4034_v20 = vld [vmem:[%s6040_s5 + $0x4] sm:$0x3] }
  0xb0   : > { %4317 = vmatprep.mubr.msk.bf16.mxu1 %vm4651_vm3, %v4650_v19  ;;  %v1191_v26 = vor.u32 %v5252_v56, %v5211_v11  ;;  %v1891_v8 = vor.u32 %v5324_v42, %v6051_v1  ;;  %v1915_v58 = vrot.slane %v1913_v48, 1  ;;  %v5362_v24 = vsel %vm1012_vm10, %v5231_v40, %v5327_v32  ;;  %v4064_v40 = vld [vmem:[%s6040_s5 + $0xe] sm:$0x3] }
  0xb1   : > { %v1056_v11 = vsel %vm1012_vm10, %v5327_v32, %v5288_v22  ;;  %v2110_v56 = vshrl.u32 %v2062_v46, 16  ;;  %v1199_v18 = vor.u32 %v1198_v53, %v1195_v21  ;;  %v1202_v29 = vshrl.u32 %v1065_v50, 16 }
  0xb2   : > { %vm6056_vm5 = vcmp.ne.s16.totalorder %v5343_v63, 0  ;;  %v2113_v5 = vshll.u32 %v2062_v46, 16  ;;  %v1920_v48 = vrot.slane %v1918_v0, 1  ;;  %v6057_v25 = vshrl.u32 %v5330_v37, 16 }
  0xb3   : > { %v1511_v1 = vsel %vm1106_vm2, %v4034_v20, 0  ;;  %vm1060_vm8 = vcmp.ne.s16.totalorder %v5362_v24, 0  ;;  %v5378_v21 = vsel %vm1627_vm1, %v5269_v60, %v1891_v8  ;;  %vm1061_vm11 = vcmp.ne.s16.totalorder %v1056_v11, 0 }
  0xb4   : > { %v1904_v0 = vsel %vm6056_vm5, %v5090_v41, 0  ;;  %v2112_v46 = vrot.slane %v2110_v56, 3  ;;  %v1204_v20 = vrot.slane %v1202_v29, 3  ;;  %v2255_v10 = vsel %vm1106_vm2, %v4064_v40, 0 }
  0xb5   : > { %v2115_v7 = vrot.slane %v2113_v5, 4  ;;  %v1926_v13 = vshll.u32 %v1904_v0, 16  ;;  %v1066_v56 = vsel %vm1060_vm8, %v5090_v41, 0  ;;  %v1423_v5 = vshll.u32 %v5330_v37, 16 }
  0xb6   : > { %4252 = vmatmul.mubr.msk.bf16.gmra.mrb[16].mxu0 %vm795_vm13, %v1090_v52  ;;  %v1911_v52 = vshrl.u32 %v1902_v17, 16  ;;  %v5385_v17 = vrot.slane %v6057_v25, 7  ;;  %vm6059_vm5 = vcmp.ne.s16.totalorder %v5378_v21, 0  ;;  %v1214_v25 = vshll.u32 %v1066_v56, 16 }
  0xb7   : > { %4318 = vmatmul.mubr.msk.bf16.gmra.mrb[12].mxu1 %vm795_vm13, %v1671_v45  ;;  %4257 = vmatprep.mubr.msk.bf16.mxu0 %vm4651_vm3, %v4650_v19  ;;  %v1205_v45 = vshll.u32 %v1065_v50, 16  ;;  %v1200_v50 = vsel %vm1183_vm14, %v1191_v26, %v1199_v18  ;;  %v2116_v40 = vor.u32 %v2115_v7, %v2112_v46 }
  0xb8   : > { %4345 = vmatprep.mubr.msk.bf16.mxu1 %vm4651_vm3, %v4650_v19  ;;  %v1916_v53 = vor.u32 %v1915_v58, %v1911_v52  ;;  %v1922_v58 = vshrl.u32 %v5319_v38, 16  ;;  %v2061_v52 = vsel %vm1061_vm11, %v5161_v35, 0 }
  0xb9   : > { %v1207_v8 = vrot.slane %v1205_v45, 4  ;;  %v2101_v26 = vshrl.u32 %v2061_v52, 16  ;;  %v2104_v29 = vshll.u32 %v2061_v52, 16  ;;  %v1928_v52 = vrot.slane %v1926_v13, 1 }
  0xba   : > { %v1921_v60 = vsel %vm6060_vm12, %v1916_v53, %v1920_v48 }
  0xbb   : > { %v2103_v38 = vrot.slane %v2101_v26, 3  ;;  %v2106_v45 = vrot.slane %v2104_v29, 4  ;;  %v1208_v53 = vor.u32 %v1207_v8, %v1204_v20  ;;  %v1905_v26 = vsel %vm6059_vm5, %v5117_v30, 0 }
  0xbc   : > { %v1216_v8 = vrot.slane %v1214_v25, 4  ;;  %v1387_v29 = vrot.slane %v1385_v44, 3  ;;  %v1390_v25 = vrot.slane %v1388_v31, 4 }
  0xbd   : > { %v5408_v51 = vor.u32 %v2106_v45, %v2103_v38  ;;  %v1209_v46 = vsel %vm1183_vm14, %v1199_v18, %v1208_v53  ;;  %v6099_v18 = vshrl.u32 %v5088_v39, 16 }
  0xbe   : > { %4258 = vmatmul.mubr.msk.bf16.vlgmr.msra.gmra.mrb[20].mxu0 %vm795_vm13, %v1200_v50  ;;  %v1211_v50 = vshrl.u32 %v1066_v56, 16  ;;  %v1067_v56 = vsel %vm1061_vm11, %v5117_v30, 0 }
  0xbf   : > { %4278 = vmatpush3.bf16.msra.mxu0 %v1511_v1  ;;  %4346 = vmatmul.mubr.msk.bf16.vlgmr.msra.gmra.mrb[16].mxu1 %vm795_vm13, %v1921_v60  ;;  %v1894_v1 = vor.u32 %v5385_v17, %v1423_v5  ;;  %v1924_v60 = vor.u32 %v1922_v58, %v1920_v48  ;;  %v5415_v7 = vsel %vm1183_vm14, %v5408_v51, %v2116_v40  ;;  %v1930_v48 = vshrl.u32 %v1904_v0, 16 }
  0xc0   : > { %4261 = vmatprep.mubr.msk.bf16.mxu0 %vm4651_vm3, %v4650_v19  ;;  %4349 = vmatprep.mubr.msk.bf16.mxu1 %vm4651_vm3, %v4650_v19  ;;  %v1213_v20 = vrot.slane %v1211_v50, 3  ;;  %v1934_v58 = vshll.u32 %v1905_v26, 16  ;;  %v1395_v38 = vrot.slane %v6099_v18, 3  ;;  %v6100_v0 = vshll.u32 %v5088_v39, 16 }
  0xc1   : > { %4388 = vmatpush3.bf16.msra.mxu1 %v2255_v10  ;;  %4299 = vmatprep.subr.bf16.mxu0 %v4650_v19  ;;  %v1895_v10 = vsel %vm1627_vm1, %v5324_v42, %v1894_v1  ;;  %v1929_v13 = vsel %vm6060_vm12, %v1924_v60, %v1928_v52  ;;  %v1220_v44 = vshrl.u32 %v1067_v56, 16  ;;  %v1223_v40 = vshll.u32 %v1067_v56, 16 }
  0xc2   : > { %v1398_v45 = vrot.slane %v6100_v0, 4  ;;  %vm1900_vm11 = vcmp.ne.s16.totalorder %v1895_v10, 0  ;;  %v1217_v11 = vor.u32 %v1216_v8, %v1213_v20  ;;  %v1932_v50 = vor.u32 %v1930_v48, %v1928_v52 }
  0xc3   : > { %v1936_v1 = vrot.slane %v1934_v58, 1  ;;  %v1906_v60 = vsel %vm1900_vm11, %v5161_v35, 0  ;;  %v1225_v18 = vrot.slane %v1223_v40, 4  ;;  %v1068_v39 = vsel %vm1062_vm6, %v5280_v59, 0 }
  0xc4   : > { %v1399_v36 = vor.u32 %v1398_v45, %v1395_v38  ;;  %v1218_v31 = vsel %vm1183_vm14, %v1208_v53, %v1217_v11  ;;  %v1938_v8 = vshrl.u32 %v1905_v26, 16  ;;  %v1942_v52 = vshll.u32 %v1906_v60, 16  ;;  %v1881_v26 = vld [vmem:[#allocation2 + $0x30] sm:$0x1] }
  0xc5   : > { %v1937_v20 = vsel %vm6060_vm12, %v1932_v50, %v1936_v1  ;;  %v6101_v10 = vshrl.u32 %v5206_v34, 16  ;;  %v6102_v59 = vshll.u32 %v5206_v34, 16  ;;  %vm1901_vm6 = vcmp.ne.s16.totalorder %v5385_v17, 0 }
  0xc6   : > { %4262 = vmatmul.mubr.msk.bf16.gmra.mrb[24].mxu0 %vm795_vm13, %v1209_v46  ;;  %v5438_v46 = vor.u32 %v1390_v25, %v1387_v29  ;;  %v1229_v56 = vshrl.u32 %v1068_v39, 16  ;;  %v1232_v29 = vshll.u32 %v1068_v39, 16  ;;  %v1940_v25 = vor.u32 %v1938_v8, %v1936_v1 }
  0xc7   : > { %4350 = vmatmul.mubr.msk.bf16.gmra.mrb[20].mxu1 %vm795_vm13, %v1929_v13  ;;  %4265 = vmatprep.mubr.msk.bf16.mxu0 %vm4651_vm3, %v4650_v19  ;;  %v1222_v13 = vrot.slane %v1220_v44, 3  ;;  %v1404_v48 = vrot.slane %v6101_v10, 3  ;;  %v1407_v22 = vrot.slane %v6102_v59, 4  ;;  %v1944_v38 = vrot.slane %v1942_v52, 1 }
  0xc8   : > { %4353 = vmatprep.mubr.msk.bf16.mxu1 %vm4651_vm3, %v4650_v19  ;;  %v5451_v53 = vsel %vm1183_vm14, %v5438_v46, %v1399_v36  ;;  %vm1428_vm11 = vcmp.ne.s16.totalorder %v5438_v46, 0  ;;  %v1907_v0 = vsel %vm1901_vm6, %v1881_v26, 0  ;;  %v1231_v40 = vrot.slane %v1229_v56, 3 }
  0xc9   : > { %v1226_v58 = vor.u32 %v1225_v18, %v1222_v13  ;;  %vm1429_vm5 = vcmp.ne.s16.totalorder %v5451_v53, 0  ;;  %v1408_v45 = vor.u32 %v1407_v22, %v1404_v48  ;;  %v1434_v34 = vsel %vm1428_vm11, %v4962_v49, 0 }
  0xca   : > { %v1234_v50 = vrot.slane %v1232_v29, 4  ;;  %v1945_v17 = vsel %vm6060_vm12, %v1940_v25, %v1944_v38  ;;  %v1950_v13 = vshll.u32 %v1907_v0, 16  ;;  %v1435_v1 = vsel %vm1429_vm5, %v5013_v16, 0 }
  0xcb   : > { %v1227_v44 = vsel %vm1183_vm14, %v1217_v11, %v1226_v58  ;;  %v1443_v49 = vshrl.u32 %v1434_v34, 16  ;;  %v6103_v11 = vshll.u32 %v5257_v54, 16  ;;  %v5479_v39 = vsel %vm1183_vm14, %v1399_v36, %v1408_v45 }
  0xcc   : > { %v1446_v8 = vshll.u32 %v1434_v34, 16  ;;  %v1235_v52 = vor.u32 %v1234_v50, %v1231_v40  ;;  %v1451_v10 = vshrl.u32 %v1435_v1, 16  ;;  %v1454_v48 = vshll.u32 %v1435_v1, 16 }
  0xcd   : > { %v1416_v18 = vrot.slane %v6103_v11, 4  ;;  %v1952_v22 = vrot.slane %v1950_v13, 1  ;;  %vm6064_vm6 = vcmp.ne.s16.totalorder %v5479_v39, 0  ;;  %v1445_v26 = vrot.slane %v1443_v49, 4 }
  0xce   : > { %4266 = vmatmul.mubr.msk.bf16.gmra.mrb[28].mxu0 %vm795_vm13, %v1218_v31  ;;  %v1946_v31 = vshrl.u32 %v1906_v60, 16  ;;  %v6104_v60 = vshrl.u32 %v5257_v54, 16  ;;  %v1448_v29 = vrot.slane %v1446_v8, 5  ;;  %v1236_v25 = vsel %vm1183_vm14, %v1226_v58, %v1235_v52 }
  0xcf   : > { %4354 = vmatmul.mubr.msk.bf16.gmra.mrb[24].mxu1 %vm795_vm13, %v1937_v20  ;;  %4269 = vmatprep.mubr.msk.bf16.mxu0 %vm4651_vm3, %v4650_v19  ;;  %v1453_v0 = vrot.slane %v1451_v10, 4  ;;  %v1456_v36 = vrot.slane %v1454_v48, 5  ;;  %v1436_v34 = vsel %vm6064_vm6, %v5054_v57, 0  ;;  %v1425_v40 = vrot.slane %v1423_v5, 4 }
  0xd0   : > { %4357 = vmatprep.mubr.msk.bf16.mxu1 %vm4651_vm3, %v4650_v19  ;;  %v1413_v20 = vrot.slane %v6104_v60, 3  ;;  %v1948_v59 = vor.u32 %v1946_v31, %v1944_v38  ;;  %v6105_v38 = vshrl.u32 %v5330_v37, 16  ;;  %v1449_v50 = vor.u32 %v1448_v29, %v1445_v26  ;;  %v5505_v31 = vld [vmem:[#allocation2 + $0x8] sm:$0xf0] }
  0xd1   : > { %v1460_v13 = vshrl.u32 %v1436_v34, 16  ;;  %v1463_v1 = vshll.u32 %v1436_v34, 16  ;;  %v2228_v49 = vrot.slane %v5505_v31, 4 }
  0xd2   : > { %v5484_v56 = vor.u32 %v1416_v18, %v1413_v20  ;;  %v1953_v54 = vsel %vm6060_vm12, %v1948_v59, %v1952_v22 }
  0xd3   : > { %v1462_v18 = vrot.slane %v1460_v13, 4  ;;  %v1465_v60 = vrot.slane %v1463_v1, 5  ;;  %v2230_v37 = vsel %vm1079_vm0, %v2228_v49, %v5082_v33  ;;  %v1596_v1 = vld [vmem:[#allocation2] sm:$0x80] }
  0xd4   : > { %v5499_v58 = vsel %vm1183_vm14, %v1408_v45, %v5484_v56 }
  0xd5   : > { %vm6062_vm12 = vcmp.ne.s16.totalorder %v5499_v58, 0  ;;  %v1466_v33 = vor.u32 %v1465_v60, %v1462_v18 }
  0xd6   : > { %4270 = vmatmul.mubr.msk.bf16.gmra.mrb[32].mxu0 %vm795_vm13, %v1227_v44  ;;  %v1422_v44 = vrot.slane %v6105_v38, 3  ;;  %v1437_v5 = vsel %vm6062_vm12, %v5090_v41, 0 }
  0xd7   : > { %4358 = vmatmul.mubr.msk.bf16.gmra.mrb[28].mxu1 %vm795_vm13, %v1945_v17  ;;  %4273 = vmatprep.mubr.msk.bf16.mxu0 %vm4651_vm3, %v4650_v19  ;;  %v1457_v17 = vor.u32 %v1456_v36, %v1453_v0  ;;  %v1469_v8 = vshrl.u32 %v1437_v5, 16  ;;  %v1472_v52 = vshll.u32 %v1437_v5, 16 }
  0xd8   : > { %4361 = vmatprep.mubr.msk.bf16.mxu1 %vm4651_vm3, %v4650_v19  ;;  %v5509_v11 = vor.u32 %v1425_v40, %v1422_v44  ;;  %v2235_v40 = vrot.slane %v5161_v35, 4 }
  0xd9   : > { %v1458_v45 = vsel %vm1012_vm10, %v1449_v50, %v1457_v17  ;;  %v1471_v10 = vrot.slane %v1469_v8, 4  ;;  %v1474_v48 = vrot.slane %v1472_v52, 5  ;;  %v4058_v52 = vld [vmem:[%s6040_s5 + $0xc] sm:$0x3] }
  0xda   : > { %v5527_v20 = vsel %vm1183_vm14, %v5484_v56, %v5509_v11  ;;  %vm6063_vm12 = vcmp.ne.s16.totalorder %v5509_v11, 0 }
  0xdb   : > { %vm1432_vm7 = vcmp.ne.s16.totalorder %v5527_v20, 0  ;;  %v1475_v22 = vor.u32 %v1474_v48, %v1471_v10 }
  0xdc   : > { %v1438_v59 = vsel %vm1432_vm7, %v5117_v30, 0 }
  0xdd   : > { %v1478_v26 = vshrl.u32 %v1438_v59, 16  ;;  %v1481_v29 = vshll.u32 %v1438_v59, 16  ;;  %v1476_v0 = vsel %vm1012_vm10, %v1466_v33, %v1475_v22 }
  0xde   : > { %4274 = vmatmul.mubr.msk.bf16.gmra.mrb[36].mxu0 %vm795_vm13, %v1236_v25  ;;  %v1328_v25 = vld [vmem:[#allocation2 + $0x28] sm:$0x1f] }
  0xdf   : > { %4362 = vmatmul.mubr.msk.bf16.gmra.mrb[32].mxu1 %vm795_vm13, %v1953_v54  ;;  %4279 = vmatprep.mubr.msk.bf16.mxu0 %vm4651_vm3, %v4650_v19  ;;  %v1480_v36 = vrot.slane %v1478_v26, 4  ;;  %v1483_v54 = vrot.slane %v1481_v29, 5 }
  0xe0   : > { %4389 = vmatprep.mubr.msk.bf16.mxu1 %vm4651_vm3, %v4650_v19 }
  0xe1   : > { %v1484_v34 = vor.u32 %v1483_v54, %v1480_v36 }
  0xe3   : > { %v1485_v50 = vsel %vm1012_vm10, %v1475_v22, %v1484_v34 }
  0xe6   : > { %4280 = vmatmul.mubr.msk.bf16.vlgmr.msra.gmra.mrb[40].mxu0 %vm795_vm13, %v1458_v45  ;;  %v2237_v45 = vrot.slane %v5314_v9, 4  ;;  %v4046_v9 = vld [vmem:[%s6040_s5 + $0x8] sm:$0x3] }
  0xe7   : > { %4300 = vmatpush3.bf16.msra.mxu0 %v4793_v28  ;;  %4390 = vmatmul.mubr.msk.bf16.vlgmr.msra.gmra.mrb[36].mxu1 %vm795_vm13, %v2230_v37  ;;  %v1467_v28 = vsel %vm1012_vm10, %v1457_v17, %v1466_v33  ;;  %v1791_v33 = vsel %vm1106_vm2, %v4046_v9, 0 }
  0xe8   : > { %4283 = vmatprep.mubr.msk.bf16.mxu0 %vm4651_vm3, %v4650_v19  ;;  %4393 = vmatprep.mubr.msk.bf16.mxu1 %vm4651_vm3, %v4650_v19  ;;  %v2238_v37 = vsel %vm1079_vm0, %v2235_v40, %v2237_v45 }
  0xe9   : > { %4321 = vmatprep.subr.bf16.mxu0 %v4650_v19 }
  0xee   : > { %4284 = vmatmul.mubr.msk.bf16.gmra.mrb[44].mxu0 %vm795_vm13, %v1467_v28  ;;  %v2134_v28 = vsel %vm1106_vm2, %v4058_v52, 0  ;;  %v2341_v52 = vsel %vm1428_vm11, %v5505_v31, 0 }
  0xef   : > { %4394 = vmatmul.mubr.msk.bf16.gmra.mrb[40].mxu1 %vm795_vm13, %v5178_v55  ;;  %4287 = vmatprep.mubr.msk.bf16.mxu0 %vm4651_vm3, %v4650_v19  ;;  %v1439_v55 = vsel %vm6063_vm12, %v1328_v25, 0  ;;  %vm1613_vm12 = vcmp.ne.s16.totalorder %v4924_v6, 0 }
  0xf0   : > { %4397 = vmatprep.mubr.msk.bf16.mxu1 %vm4651_vm3, %v4650_v19  ;;  %v1487_v38 = vshrl.u32 %v1439_v55, 16  ;;  %v1490_v44 = vshll.u32 %v1439_v55, 16  ;;  %v1619_v18 = vsel %vm1613_vm12, %v1596_v1, 0  ;;  %v2060_v1 = vsel %vm1060_vm8, %v5117_v30, 0 }
  0xf1   : > { %v2092_v45 = vshrl.u32 %v2060_v1, 16 }
  0xf2   : > { %v1489_v17 = vrot.slane %v1487_v38, 4  ;;  %v1492_v13 = vrot.slane %v1490_v44, 5 }
  0xf4   : > { %v1493_v49 = vor.u32 %v1492_v13, %v1489_v17 }
  0xf6   : > { %4288 = vmatmul.mubr.msk.bf16.gmra.mrb[48].mxu0 %vm795_vm13, %v1476_v0  ;;  %v1494_v60 = vsel %vm1012_vm10, %v1484_v34, %v1493_v49  ;;  %v2059_v0 = vsel %vm1059_vm15, %v5090_v41, 0  ;;  %v4070_v34 = vld [vmem:[%s6040_s5 + $0x10] sm:$0x3] }
  0xf7   : > { %4398 = vmatmul.mubr.msk.bf16.gmra.mrb[44].mxu1 %vm795_vm13, %v5261_v62  ;;  %4291 = vmatprep.mubr.msk.bf16.mxu0 %vm4651_vm3, %v4650_v19  ;;  %v2236_v62 = vsel %vm1079_vm0, %v5217_v2, %v2235_v40  ;;  %v1629_v2 = vshrl.u32 %v1619_v18, 16  ;;  %v2083_v38 = vshrl.u32 %v2059_v0, 16  ;;  %v2086_v44 = vshll.u32 %v2059_v0, 16 }
  0xf8   : > { %4401 = vmatprep.mubr.msk.bf16.mxu1 %vm4651_vm3, %v4650_v19  ;;  %v2095_v18 = vshll.u32 %v2060_v1, 16 }
  0xf9   : > { %v1631_v5 = vrot.slane %v1629_v2, 7  ;;  %v2085_v13 = vrot.slane %v2083_v38, 3  ;;  %v2094_v2 = vrot.slane %v2092_v45, 3 }
  0xfb   : > { %v1639_v8 = vsel %vm1627_vm1, %v1631_v5, %v5077_v4  ;;  %v2055_v4 = vld [vmem:[#allocation2 + $0x8] sm:$0xf8] }
  0xfc   : > { %v2057_v10 = vsel %vm1057_vm4, %v2055_v4, 0 }
  0xfd   : > { %v2066_v22 = vshrl.u32 %v2057_v10, 16  ;;  %v2069_v26 = vshll.u32 %v2057_v10, 16  ;;  %v2353_v10 = vshll.u32 %v2341_v52, 16 }
  0xfe   : > { %4292 = vmatmul.mubr.msk.bf16.gmra.mrb[52].mxu0 %vm795_vm13, %v1485_v50  ;;  %v2418_v50 = vsel %vm1106_vm2, %v4070_v34, 0  ;;  %vm6106_vm2 = vcmp.ne.s16.totalorder %v5499_v58, 0 }
  0xff   : > { %4402 = vmatmul.mubr.msk.bf16.gmra.mrb[48].mxu1 %vm795_vm13, %v2236_v62  ;;  %4295 = vmatprep.mubr.msk.bf16.mxu0 %vm4651_vm3, %v4650_v19  ;;  %v2068_v36 = vrot.slane %v2066_v22, 3  ;;  %v2071_v54 = vrot.slane %v2069_v26, 4  ;;  %v2088_v62 = vrot.slane %v2086_v44, 4  ;;  %v2355_v22 = vrot.slane %v2353_v10, 5 }
 0x100   : > { %4405 = vmatprep.mubr.msk.bf16.mxu1 %vm4651_vm3, %v4650_v19 }
 0x101   : > { %v2072_v40 = vor.u32 %v2071_v54, %v2068_v36  ;;  %v2089_v49 = vor.u32 %v2088_v62, %v2085_v13 }
 0x106   : > { %4296 = vmatmul.mubr.msk.bf16.gmra.mrb[56].mxu0 %vm795_vm13, %v1494_v60 }
 0x107   : > { %4406 = vmatmul.mubr.msk.bf16.gmra.mrb[52].mxu1 %vm795_vm13, %v2238_v37  ;;  %4301 = vmatprep.mubr.msk.bf16.mxu0 %vm4651_vm3, %v4650_v19  ;;  %v2097_v37 = vrot.slane %v2095_v18, 4 }
 0x109   : > { %v2098_v5 = vor.u32 %v2097_v37, %v2094_v2 }
 0x10b   : > { %v2099_v9 = vsel %vm1183_vm14, %v2089_v49, %v2098_v5 }
 0x10e   : > { %4302 = vmatmul.mubr.msk.bf16.vlgmr.msra.gmra.mrb[60].mxu0 %vm795_vm13, %v1639_v8  ;;  %v2342_v8 = vsel %vm1429_vm5, %v5054_v57, 0 }
 0x10f   : > { %4322 = vmatpush3.bf16.msra.mxu0 %v1791_v33  ;;  %4323 = vmatprep.mubr.msk.bf16.mxu0 %vm4651_vm3, %v4650_v19  ;;  %v2108_v33 = vsel %vm1183_vm14, %v2098_v5, %v5408_v51  ;;  %v2361_v4 = vshll.u32 %v2342_v8, 16 }
 0x110   : > { %4365 = vmatprep.subr.bf16.mxu0 %v4650_v19 }
 0x116   : > { %4324 = vmatmul.mubr.msk.bf16.vlgmr.msra.gmra.mrb[64].mxu0 %vm795_vm13, %v5013_v16  ;;  %v2058_v16 = vsel %vm1058_vm9, %v5054_v57, 0 }
 0x117   : > { %4366 = vmatpush3.bf16.msra.mxu0 %v2134_v28  ;;  %4327 = vmatprep.mubr.msk.bf16.mxu0 %vm4651_vm3, %v4650_v19  ;;  %v2074_v48 = vshrl.u32 %v2058_v16, 16  ;;  %v2077_v59 = vshll.u32 %v2058_v16, 16  ;;  %v2358_v28 = vshrl.u32 %v2342_v8, 16  ;;  %v2350_v16 = vshrl.u32 %v2341_v52, 16 }
 0x118   : > { %4409 = vmatprep.subr.bf16.mxu0 %v4650_v19 }
 0x119   : > { %v2076_v29 = vrot.slane %v2074_v48, 3  ;;  %v2079_v25 = vrot.slane %v2077_v59, 4  ;;  %v2360_v48 = vrot.slane %v2358_v28, 4  ;;  %v2363_v59 = vrot.slane %v2361_v4, 5 }
 0x11a   : > { %v2352_v51 = vrot.slane %v2350_v16, 4 }
 0x11b   : > { %v2080_v55 = vor.u32 %v2079_v25, %v2076_v29  ;;  %v2364_v26 = vor.u32 %v2363_v59, %v2360_v48 }
 0x11c   : > { %v2356_v25 = vor.u32 %v2355_v22, %v2352_v51 }
 0x11d   : > { %v2081_v17 = vsel %vm1183_vm14, %v2072_v40, %v2080_v55  ;;  %v2090_v60 = vsel %vm1183_vm14, %v2080_v55, %v2089_v49 }
 0x11e   : > { %4328 = vmatmul.mubr.msk.bf16.gmra.mrb[68].mxu0 %vm795_vm13, %v5054_v57  ;;  %v2343_v57 = vsel %vm6064_vm6, %v5090_v41, 0  ;;  %v2365_v0 = vsel %vm1012_vm10, %v2356_v25, %v2364_v26 }
 0x11f   : > { %4331 = vmatprep.mubr.msk.bf16.mxu0 %vm4651_vm3, %v4650_v19  ;;  %v2367_v31 = vshrl.u32 %v2343_v57, 16  ;;  %v2370_v29 = vshll.u32 %v2343_v57, 16 }
 0x121   : > { %v2369_v36 = vrot.slane %v2367_v31, 4  ;;  %v2372_v54 = vrot.slane %v2370_v29, 5 }
 0x123   : > { %v2373_v55 = vor.u32 %v2372_v54, %v2369_v36 }
 0x126   : > { %4332 = vmatmul.mubr.msk.bf16.gmra.mrb[72].mxu0 %vm795_vm13, %v5090_v41 }
 0x127   : > { %4335 = vmatprep.mubr.msk.bf16.mxu0 %vm4651_vm3, %v4650_v19 }
 0x12e   : > { %4336 = vmatmul.mubr.msk.bf16.gmra.mrb[76].mxu0 %vm795_vm13, %v5117_v30 }
 0x12f   : > { %4339 = vmatprep.mubr.msk.bf16.mxu0 %vm4651_vm3, %v4650_v19 }
 0x136   : > { %4340 = vmatmul.mubr.msk.bf16.gmra.mrb[80].mxu0 %vm795_vm13, %v5161_v35 }
 0x137   : > { %4367 = vmatprep.mubr.msk.bf16.mxu0 %vm4651_vm3, %v4650_v19 }
 0x13e   : > { %4368 = vmatmul.mubr.msk.bf16.vlgmr.msra.gmra.mrb[84].mxu0 %vm795_vm13, %v2081_v17  ;;  %v2374_v17 = vsel %vm1012_vm10, %v2364_v26, %v2373_v55 }
 0x13f   : > { %4410 = vmatpush3.bf16.msra.mxu0 %v2418_v50  ;;  %4371 = vmatprep.mubr.msk.bf16.mxu0 %vm4651_vm3, %v4650_v19 }
 0x146   : > { %4372 = vmatmul.mubr.msk.bf16.gmra.mrb[88].mxu0 %vm795_vm13, %v2090_v60 }
 0x147   : > { %4375 = vmatprep.mubr.msk.bf16.mxu0 %vm4651_vm3, %v4650_v19 }
 0x14e   : > { %4376 = vmatmul.mubr.msk.bf16.gmra.mrb[92].mxu0 %vm795_vm13, %v2099_v9  ;;  %v2340_v9 = vld [vmem:[#allocation2 + $0x30] sm:$0x1f] }
 0x14f   : > { %4379 = vmatprep.mubr.msk.bf16.mxu0 %vm4651_vm3, %v4650_v19 }
 0x156   : > { %4380 = vmatmul.mubr.msk.bf16.gmra.mrb[96].mxu0 %vm795_vm13, %v2108_v33 }
 0x157   : > { %4383 = vmatprep.mubr.msk.bf16.mxu0 %vm4651_vm3, %v4650_v19 }
 0x15e   : > { %4384 = vmatmul.mubr.msk.bf16.gmra.mrb[100].mxu0 %vm795_vm13, %v5415_v7  ;;  %v2344_v7 = vsel %vm6106_vm2, %v5117_v30, 0  ;;  %v2345_v30 = vsel %vm1432_vm7, %v5161_v35, 0  ;;  %vm6107_vm7 = vcmp.ne.s16.totalorder %v5509_v11, 0  ;;  %vm2644_vm2 = vcmask 64512  }
 0x15f   : > { %4411 = vmatprep.mubr.msk.bf16.mxu0 %vm4651_vm3, %v4650_v19  ;;  %v2376_v34 = vshrl.u32 %v2344_v7, 16  ;;  %v2379_v38 = vshll.u32 %v2344_v7, 16  ;;  %v2385_v45 = vshrl.u32 %v2345_v30, 16  ;;  %v2388_v18 = vshll.u32 %v2345_v30, 16 }
 0x160   : > { %v2346_v4 = vsel %vm6107_vm7, %v2340_v9, 0  ;;  %vm2655_vm7 = vcmp.ne.s16.totalorder %v5327_v32, 0 }
 0x161   : > { %v2378_v13 = vrot.slane %v2376_v34, 4  ;;  %v2381_v62 = vrot.slane %v2379_v38, 5  ;;  %v2387_v20 = vrot.slane %v2385_v45, 4  ;;  %v2390_v28 = vrot.slane %v2388_v18, 5 }
 0x162   : > { %v2394_v48 = vshrl.u32 %v2346_v4, 16  ;;  %v2397_v59 = vshll.u32 %v2346_v4, 16 }
 0x163   : > { %v2382_v49 = vor.u32 %v2381_v62, %v2378_v13  ;;  %v2391_v10 = vor.u32 %v2390_v28, %v2387_v20 }
 0x164   : > { %v2396_v11 = vrot.slane %v2394_v48, 4  ;;  %v2399_v36 = vrot.slane %v2397_v59, 5 }
 0x165   : > { %v2383_v35 = vsel %vm1012_vm10, %v2373_v55, %v2382_v49 }
 0x166   : > { %4412 = vmatmul.mubr.msk.bf16.vlgmr.msra.gmra.mrb[104].mxu0 %vm795_vm13, %v2365_v0  ;;  %v2392_v0 = vsel %vm1012_vm10, %v2382_v49, %v2391_v10  ;;  %v2400_v7 = vor.u32 %v2399_v36, %v2396_v11 }
 0x167   : > { %4415 = vmatprep.mubr.msk.bf16.mxu0 %vm4651_vm3, %v4650_v19 }
 0x168   : > { %v2401_v13 = vsel %vm1012_vm10, %v2391_v10, %v2400_v7 }
 0x169   : > { %v1144_v41 = vpop.f32.mrb[0].mxu0 }
 0x16a   : > { %v4237_v44 = vpop.f32.mrb[1].mxu0 }
 0x16b   : > { %v5660_v40 = vpop.f32.mrb[2].mxu0 }
 0x16c   : > { %v4238_v50 = vpop.f32.mrb[3].mxu0 }
 0x16e   : > { %4416 = vmatmul.mubr.msk.bf16.gmra.mrb[108].mxu0 %vm795_vm13, %v2374_v17 }
 0x16f   : > { %4419 = vmatprep.mubr.msk.bf16.mxu0 %vm4651_vm3, %v4650_v19 }
 0x171   : > { %v5669_v1 = vpop.f32.mrb[4].mxu0 }
 0x172   : > { %v4241_v60 = vpop.f32.mrb[5].mxu0  ;;  %v5671_v2 = vpop.f32.mrb[0].mxu1 }
 0x173   : > { %v1155_v37 = vpop.f32.mrb[6].mxu0  ;;  %v4307_v5 = vpop.f32.mrb[1].mxu1 }
 0x174   : > { %v4242_v33 = vpop.f32.mrb[7].mxu0  ;;  %v5673_v8 = vpop.f32.mrb[2].mxu1 }
 0x175   : > { %v4308_v52 = vpop.f32.mrb[3].mxu1 }
 0x176   : > { %4420 = vmatmul.mubr.msk.bf16.gmra.mrb[112].mxu0 %vm795_vm13, %v2383_v35 }
 0x177   : > { %4423 = vmatprep.mubr.msk.bf16.mxu0 %vm4651_vm3, %v4650_v19 }
 0x179   : > { %v1160_v16 = vpop.f32.mrb[8].mxu0 }
 0x17a   : > { %v4245_v57 = vpop.f32.mrb[9].mxu0  ;;  %v5681_v51 = vpop.f32.mrb[4].mxu1 }
 0x17b   : > { %v1163_v22 = vpop.f32.mrb[10].mxu0  ;;  %v4311_v26 = vpop.f32.mrb[5].mxu1 }
 0x17c   : > { %v4246_v31 = vpop.f32.mrb[11].mxu0  ;;  %v5683_v29 = vpop.f32.mrb[6].mxu1 }
 0x17d   : > { %v4312_v25 = vpop.f32.mrb[7].mxu1 }
 0x17e   : > { %4424 = vmatmul.mubr.msk.bf16.gmra.mrb[116].mxu0 %vm795_vm13, %v2392_v0 }
 0x17f   : > { %4427 = vmatprep.mubr.msk.bf16.mxu0 %vm4651_vm3, %v4650_v19  ;;  %vm2616_vm3 = vcmask 64516  }
 0x181   : > { %v1168_v54 = vpop.f32.mrb[12].mxu0 }
 0x182   : > { %v4249_v41 = vpop.f32.mrb[13].mxu0  ;;  %v5689_v55 = vpop.f32.mrb[8].mxu1 }
 0x183   : > { %v1171_v34 = vpop.f32.mrb[14].mxu0  ;;  %v4315_v38 = vpop.f32.mrb[9].mxu1 }
 0x184   : > { %v4250_v44 = vpop.f32.mrb[15].mxu0  ;;  %v5691_v50 = vpop.f32.mrb[10].mxu1 }
 0x185   : > { %v4316_v17 = vpop.f32.mrb[11].mxu1 }
 0x186   : > { %4428 = vmatmul.mubr.msk.bf16.gmra.mrb[120].mxu0 %vm795_vm13, %v2401_v13  ;;  %vm2614_vm13 = vcmask 60416  }
 0x189   : > { %v1176_v62 = vpop.f32.mrb[16].mxu0 }
 0x18a   : > { %v4253_v30 = vpop.f32.mrb[17].mxu0  ;;  %v5695_v49 = vpop.f32.mrb[12].mxu1 }
 0x18b   : > { %v1179_v45 = vpop.f32.mrb[18].mxu0  ;;  %v4319_v18 = vpop.f32.mrb[13].mxu1 }
 0x18c   : > { %v4254_v60 = vpop.f32.mrb[19].mxu0  ;;  %v1759_v5 = vpop.f32.mrb[14].mxu1 }
 0x18d   : > { %v4320_v9 = vpop.f32.mrb[15].mxu1 }
 0x191   : > { %v1289_v33 = vpop.f32.mrb[20].mxu0 }
 0x192   : > { %v4259_v52 = vpop.f32.mrb[21].mxu0  ;;  %v2006_v35 = vpop.f32.mrb[16].mxu1 }
 0x193   : > { %v1292_v20 = vpop.f32.mrb[22].mxu0  ;;  %v4347_v28 = vpop.f32.mrb[17].mxu1 }
 0x194   : > { %v1293_v4 = vadd.f32 %v1292_v20, %v5660_v40  ;;  %v4260_v48 = vpop.f32.mrb[23].mxu0  ;;  %v5698_v10 = vpop.f32.mrb[18].mxu1 }
 0x195   : > { %v4348_v59 = vpop.f32.mrb[19].mxu1 }
 0x199   : > { %v1297_v57 = vpop.f32.mrb[24].mxu0 }
 0x19a   : > { %v1298_v26 = vadd.f32 %v1297_v57, %v5669_v1  ;;  %v4263_v31 = vpop.f32.mrb[25].mxu0  ;;  %v5701_v25 = vpop.f32.mrb[20].mxu1 }
 0x19b   : > { %v1300_v0 = vpop.f32.mrb[26].mxu0  ;;  %v4351_v11 = vpop.f32.mrb[21].mxu1 }
 0x19c   : > { %v1301_v36 = vadd.f32 %v1300_v0, %v1155_v37  ;;  %v4264_v7 = vpop.f32.mrb[27].mxu0  ;;  %v5703_v41 = vpop.f32.mrb[22].mxu1 }
 0x19d   : > { %v4352_v38 = vpop.f32.mrb[23].mxu1 }
 0x1a1   : > { %v1305_v44 = vpop.f32.mrb[28].mxu0 }
 0x1a2   : > { %v1306_v17 = vadd.f32 %v1305_v44, %v1160_v16  ;;  %v4267_v40 = vpop.f32.mrb[29].mxu0  ;;  %v5705_v13 = vpop.f32.mrb[24].mxu1 }
 0x1a3   : > { %v1308_v30 = vpop.f32.mrb[30].mxu0  ;;  %v4355_v45 = vpop.f32.mrb[25].mxu1 }
 0x1a4   : > { %v1309_v18 = vadd.f32 %v1308_v30, %v1163_v22  ;;  %v4268_v60 = vpop.f32.mrb[31].mxu0  ;;  %v5707_v1 = vpop.f32.mrb[26].mxu1 }
 0x1a5   : > { %v4356_v5 = vpop.f32.mrb[27].mxu1 }
 0x1a9   : > { %v1313_v9 = vpop.f32.mrb[32].mxu0 }
 0x1aa   : > { %v1314_v33 = vadd.f32 %v1313_v9, %v1168_v54  ;;  %v4271_v52 = vpop.f32.mrb[33].mxu0  ;;  %v5709_v37 = vpop.f32.mrb[28].mxu1 }
 0x1ab   : > { %v1316_v35 = vpop.f32.mrb[34].mxu0  ;;  %v4359_v20 = vpop.f32.mrb[29].mxu1 }
 0x1ac   : > { %v1317_v28 = vadd.f32 %v1316_v35, %v1171_v34  ;;  %v4272_v48 = vpop.f32.mrb[35].mxu0  ;;  %v5711_v16 = vpop.f32.mrb[30].mxu1  ;;  %v6108_v20 = vmov 0  }
 0x1ad   : > { %v4360_v59 = vpop.f32.mrb[31].mxu1  ;;  %2617 = vst.msk [vmem:[#allocation3 + $0x28] sm:$0xf0] %vm2616_vm3, %v6108_v20 }
 0x1ae   : > { %2615 = vst.msk [vmem:[#allocation3] sm:$0xf] %vm2614_vm13, %v6108_v20 }
 0x1b1   : > { %v1321_v57 = vpop.f32.mrb[36].mxu0 }
 0x1b2   : > { %v1322_v31 = vadd.f32 %v1321_v57, %v1176_v62  ;;  %v4275_v0 = vpop.f32.mrb[37].mxu0  ;;  %v5713_v22 = vpop.f32.mrb[32].mxu1 }
 0x1b3   : > { %v1324_v11 = vpop.f32.mrb[38].mxu0  ;;  %v4363_v7 = vpop.f32.mrb[33].mxu1 }
 0x1b4   : > { %v4276_v38 = vpop.f32.mrb[39].mxu0  ;;  %v2041_v44 = vpop.f32.mrb[34].mxu1 }
 0x1b5   : > { %v4364_v54 = vpop.f32.mrb[35].mxu1 }
 0x1b9   : > { %v1547_v40 = vpop.f32.mrb[40].mxu0 }
 0x1ba   : > { %v4281_v30 = vpop.f32.mrb[41].mxu0  ;;  %v2291_v45 = vpop.f32.mrb[36].mxu1 }
 0x1bb   : > { %v1550_v60 = vpop.f32.mrb[42].mxu0  ;;  %v4391_v5 = vpop.f32.mrb[37].mxu1  ;;  %v4077_v30 = vld [vmem:[%s6042_s7 + $0x4] sm:$0xf] }
 0x1bc   : > { %v1587_v34 = vadd.f32 %v1550_v60, %v1293_v4  ;;  %v4282_v9 = vpop.f32.mrb[43].mxu0  ;;  %v5715_v52 = vpop.f32.mrb[38].mxu1  ;;  %4587 = vmatprep.subr.msk.bf16.mxu1 %vm1079_vm0, %v4077_v30 }
 0x1bd   : > { %v4392_v35 = vpop.f32.mrb[39].mxu1 }
 0x1c1   : > { %v1555_v62 = vpop.f32.mrb[44].mxu0 }
 0x1c2   : > { %v1588_v48 = vadd.f32 %v1555_v62, %v1298_v26  ;;  %v4285_v59 = vpop.f32.mrb[45].mxu0  ;;  %v5719_v57 = vpop.f32.mrb[40].mxu1  ;;  %v2693_v26 = vsel %vm1079_vm0, %v4077_v30, 0 }
 0x1c3   : > { %v1558_v0 = vpop.f32.mrb[46].mxu0  ;;  %v4395_v11 = vpop.f32.mrb[41].mxu1  ;;  %4432 = vmatpush3.bf16.msra.mxu1 %v2693_v26 }
 0x1c4   : > { %v1589_v7 = vadd.f32 %v1558_v0, %v1301_v36  ;;  %v4286_v38 = vpop.f32.mrb[47].mxu0  ;;  %v5721_v44 = vpop.f32.mrb[42].mxu1  ;;  %v1765_v4 = vadd.f32 %v5671_v2, %v1588_v48 }
 0x1c5   : > { %v4396_v54 = vpop.f32.mrb[43].mxu1 }
 0x1c6   : > { %v1766_v40 = vadd.f32 %v5673_v8, %v1589_v7 }
 0x1c9   : > { %v1563_v45 = vpop.f32.mrb[48].mxu0 }
 0x1ca   : > { %v1590_v60 = vadd.f32 %v1563_v45, %v1306_v17  ;;  %v4289_v36 = vpop.f32.mrb[49].mxu0  ;;  %v5730_v5 = vpop.f32.mrb[44].mxu1 }
 0x1cb   : > { %v1566_v9 = vpop.f32.mrb[50].mxu0  ;;  %v4399_v35 = vpop.f32.mrb[45].mxu1 }
 0x1cc   : > { %v1591_v2 = vadd.f32 %v1566_v9, %v1309_v18  ;;  %v4290_v62 = vpop.f32.mrb[51].mxu0  ;;  %v5732_v48 = vpop.f32.mrb[46].mxu1  ;;  %v1767_v8 = vadd.f32 %v5681_v51, %v1590_v60 }
 0x1cd   : > { %v4400_v59 = vpop.f32.mrb[47].mxu1 }
 0x1ce   : > { %v1768_v0 = vadd.f32 %v5683_v29, %v1591_v2 }
 0x1d1   : > { %v1571_v11 = vpop.f32.mrb[52].mxu0 }
 0x1d2   : > { %v1592_v7 = vadd.f32 %v1571_v11, %v1314_v33  ;;  %v4293_v38 = vpop.f32.mrb[53].mxu0  ;;  %v5736_v54 = vpop.f32.mrb[48].mxu1 }
 0x1d3   : > { %v1574_v17 = vpop.f32.mrb[54].mxu0  ;;  %v4403_v30 = vpop.f32.mrb[49].mxu1 }
 0x1d4   : > { %v1593_v26 = vadd.f32 %v1574_v17, %v1317_v28  ;;  %v4294_v45 = vpop.f32.mrb[55].mxu0  ;;  %v5738_v36 = vpop.f32.mrb[50].mxu1  ;;  %v1769_v18 = vadd.f32 %v5689_v55, %v1592_v7 }
 0x1d5   : > { %v4404_v9 = vpop.f32.mrb[51].mxu1 }
 0x1d6   : > { %v1770_v35 = vadd.f32 %v5691_v50, %v1593_v26 }
 0x1d9   : > { %v1579_v51 = vpop.f32.mrb[56].mxu0 }
 0x1da   : > { %v1594_v60 = vadd.f32 %v1579_v51, %v1322_v31  ;;  %v4297_v62 = vpop.f32.mrb[57].mxu0  ;;  %v5742_v29 = vpop.f32.mrb[52].mxu1  ;;  %v5750_v31 = vld [vmem:[%s6042_s7] sm:$0xf] }
 0x1db   : > { %v1582_v33 = vpop.f32.mrb[58].mxu0  ;;  %v4407_v2 = vpop.f32.mrb[53].mxu1  ;;  %4588 = vmatprep.subr.msk.bf16.mxu1 %vm1079_vm0, %v5750_v31 }
 0x1dc   : > { %v4298_v59 = vpop.f32.mrb[59].mxu0  ;;  %v2326_v11 = vpop.f32.mrb[54].mxu1  ;;  %v1771_v38 = vadd.f32 %v5695_v49, %v1594_v60 }
 0x1dd   : > { %v4408_v28 = vpop.f32.mrb[55].mxu1 }
 0x1e1   : > { %v1724_v55 = vpop.f32.mrb[60].mxu0 }
 0x1e2   : > { %v4303_v7 = vpop.f32.mrb[61].mxu0 }
 0x1e3   : > { %v1727_v17 = vpop.f32.mrb[62].mxu0 }
 0x1e4   : > { %v1764_v50 = vadd.f32 %v1727_v17, %v1587_v34  ;;  %v4304_v30 = vpop.f32.mrb[63].mxu0 }
 0x1e9   : > { %v1827_v26 = vpop.f32.mrb[64].mxu0 }
 0x1ea   : > { %v4325_v49 = vpop.f32.mrb[65].mxu0 }
 0x1eb   : > { %v1830_v45 = vpop.f32.mrb[66].mxu0 }
 0x1ec   : > { %v1867_v9 = vadd.f32 %v1830_v45, %v1764_v50  ;;  %v4326_v51 = vpop.f32.mrb[67].mxu0 }
 0x1ee   : > { %v2046_v20 = vadd.f32 %v5698_v10, %v1867_v9 }
 0x1f1   : > { %v1835_v60 = vpop.f32.mrb[68].mxu0 }
 0x1f2   : > { %v1868_v62 = vadd.f32 %v1835_v60, %v1765_v4  ;;  %v4329_v33 = vpop.f32.mrb[69].mxu0 }
 0x1f3   : > { %v1838_v34 = vpop.f32.mrb[70].mxu0 }
 0x1f4   : > { %v1869_v2 = vadd.f32 %v1838_v34, %v1766_v40  ;;  %v4330_v59 = vpop.f32.mrb[71].mxu0  ;;  %v2047_v11 = vadd.f32 %v5701_v25, %v1868_v62 }
 0x1f6   : > { %v2048_v28 = vadd.f32 %v5703_v41, %v1869_v2 }
 0x1f9   : > { %v1843_v55 = vpop.f32.mrb[72].mxu0 }
 0x1fa   : > { %v1870_v7 = vadd.f32 %v1843_v55, %v1767_v8  ;;  %v4333_v17 = vpop.f32.mrb[73].mxu0 }
 0x1fb   : > { %v1846_v30 = vpop.f32.mrb[74].mxu0 }
 0x1fc   : > { %v1871_v26 = vadd.f32 %v1846_v30, %v1768_v0  ;;  %v4334_v49 = vpop.f32.mrb[75].mxu0  ;;  %v2049_v50 = vadd.f32 %v5705_v13, %v1870_v7 }
 0x1fe   : > { %v2050_v10 = vadd.f32 %v5707_v1, %v1871_v26 }
 0x201   : > { %v1851_v45 = vpop.f32.mrb[76].mxu0 }
 0x202   : > { %v1872_v4 = vadd.f32 %v1851_v45, %v1769_v18  ;;  %v4337_v9 = vpop.f32.mrb[77].mxu0 }
 0x203   : > { %v1854_v51 = vpop.f32.mrb[78].mxu0 }
 0x204   : > { %v1873_v40 = vadd.f32 %v1854_v51, %v1770_v35  ;;  %v4338_v60 = vpop.f32.mrb[79].mxu0  ;;  %v2051_v25 = vadd.f32 %v5709_v37, %v1872_v4 }
 0x206   : > { %v2052_v41 = vadd.f32 %v5711_v16, %v1873_v40 }
 0x209   : > { %v1859_v62 = vpop.f32.mrb[80].mxu0 }
 0x20a   : > { %v1874_v8 = vadd.f32 %v1859_v62, %v1771_v38  ;;  %v4341_v33 = vpop.f32.mrb[81].mxu0 }
 0x20b   : > { %v1862_v34 = vpop.f32.mrb[82].mxu0 }
 0x20c   : > { %v4342_v0 = vpop.f32.mrb[83].mxu0  ;;  %v2053_v2 = vadd.f32 %v5713_v22, %v1874_v8 }
 0x211   : > { %v2170_v13 = vpop.f32.mrb[84].mxu0 }
 0x212   : > { %v4369_v59 = vpop.f32.mrb[85].mxu0 }
 0x213   : > { %v2173_v1 = vpop.f32.mrb[86].mxu0 }
 0x214   : > { %v2210_v55 = vadd.f32 %v2173_v1, %v2046_v20  ;;  %v4370_v18 = vpop.f32.mrb[87].mxu0 }
 0x216   : > { %v2331_v7 = vadd.f32 %v5715_v52, %v2210_v55 }
 0x219   : > { %v2178_v35 = vpop.f32.mrb[88].mxu0 }
 0x21a   : > { %v2211_v17 = vadd.f32 %v2178_v35, %v2047_v11  ;;  %v4373_v30 = vpop.f32.mrb[89].mxu0 }
 0x21b   : > { %v2181_v37 = vpop.f32.mrb[90].mxu0 }
 0x21c   : > { %v2212_v26 = vadd.f32 %v2181_v37, %v2048_v28  ;;  %v4374_v16 = vpop.f32.mrb[91].mxu0  ;;  %v2332_v38 = vadd.f32 %v5719_v57, %v2211_v17 }
 0x21e   : > { %v2333_v49 = vadd.f32 %v5721_v44, %v2212_v26 }
 0x221   : > { %v2186_v45 = vpop.f32.mrb[92].mxu0 }
 0x222   : > { %v2213_v4 = vadd.f32 %v2186_v45, %v2049_v50  ;;  %v4377_v22 = vpop.f32.mrb[93].mxu0 }
 0x223   : > { %v2189_v9 = vpop.f32.mrb[94].mxu0 }
 0x224   : > { %v2214_v51 = vadd.f32 %v2189_v9, %v2050_v10  ;;  %v4378_v40 = vpop.f32.mrb[95].mxu0  ;;  %v2334_v20 = vadd.f32 %v5730_v5, %v2213_v4 }
 0x226   : > { %v2335_v52 = vadd.f32 %v5732_v48, %v2214_v51 }
 0x229   : > { %v2194_v60 = vpop.f32.mrb[96].mxu0 }
 0x22a   : > { %v2215_v11 = vadd.f32 %v2194_v60, %v2051_v25  ;;  %v4381_v62 = vpop.f32.mrb[97].mxu0  ;;  %v4076_v25 = vld [vmem:[%s6041_s6] ss:$0 sm:$0xff] }
 0x22b   : > { %v2197_v8 = vpop.f32.mrb[98].mxu0 }
 0x22c   : > { %v2216_v28 = vadd.f32 %v2197_v8, %v2052_v41  ;;  %v4382_v33 = vpop.f32.mrb[99].mxu0  ;;  %v2336_v57 = vadd.f32 %v5736_v54, %v2215_v11 }
 0x22e   : > { %v2337_v44 = vadd.f32 %v5738_v36, %v2216_v28 }
 0x231   : > { %v2202_v34 = vpop.f32.mrb[100].mxu0 }
 0x232   : > { %v2217_v50 = vadd.f32 %v2202_v34, %v2053_v2  ;;  %v4385_v0 = vpop.f32.mrb[101].mxu0 }
 0x233   : > { %v2205_v13 = vpop.f32.mrb[102].mxu0 }
 0x234   : > { %v4386_v10 = vpop.f32.mrb[103].mxu0  ;;  %v2338_v59 = vadd.f32 %v5742_v29, %v2217_v50 }
 0x239   : > { %v2454_v5 = vpop.f32.mrb[104].mxu0 }
 0x23a   : > { %v4413_v1 = vpop.f32.mrb[105].mxu0 }
 0x23b   : > { %v2457_v48 = vpop.f32.mrb[106].mxu0 }
 0x23c   : > { %v2494_v41 = vadd.f32 %v2457_v48, %v2331_v7  ;;  %v4414_v55 = vpop.f32.mrb[107].mxu0 }
 0x23e   : > { %v2511_v18 = vadd.f32 %v4076_v25, %v2494_v41 }
 0x240   : > { %v2521_v54 = vmax.f32 %v2511_v18, 0.0 }
 0x241   : > { %v2462_v35 = vpop.f32.mrb[108].mxu0 }
 0x242   : > { %v2618_v36 = vpack.c.bf16 %v2521_v54, %v4650_v19  ;;  %v2495_v2 = vadd.f32 %v2462_v35, %v2332_v38  ;;  %v4417_v17 = vpop.f32.mrb[109].mxu0 }
 0x243   : > { %v2465_v30 = vpop.f32.mrb[110].mxu0 }
 0x244   : > { %v2628_v37 = vrot.slane %v2618_v36, 4  ;;  %v2512_v26 = vadd.f32 %v4076_v25, %v2495_v2  ;;  %v2496_v29 = vadd.f32 %v2465_v30, %v2333_v49  ;;  %v4418_v16 = vpop.f32.mrb[111].mxu0 }
 0x246   : > { %2643 = vst.msk [vmem:[#allocation3] sm:$0xf0] %vm2616_vm3, %v2628_v37  ;;  %v2513_v45 = vadd.f32 %v4076_v25, %v2496_v29  ;;  %v2522_v4 = vmax.f32 %v2512_v26, 0.0  ;;  %vm6109_vm3 = vcmp.ne.s16.totalorder %v5499_v58, 0 }
 0x248   : > { %v2523_v22 = vmax.f32 %v2513_v45, 0.0 }
 0x249   : > { %v2470_v9 = vpop.f32.mrb[112].mxu0 }
 0x24a   : > { %v2619_v7 = vpack.c.bf16 %v2523_v22, %v2522_v4  ;;  %v2497_v51 = vadd.f32 %v2470_v9, %v2334_v20  ;;  %v4421_v40 = vpop.f32.mrb[113].mxu0 }
 0x24b   : > { %v2473_v60 = vpop.f32.mrb[114].mxu0 }
 0x24c   : > { %v2629_v11 = vrot.slane %v2619_v7, 4  ;;  %v2514_v62 = vadd.f32 %v4076_v25, %v2497_v51  ;;  %v2498_v38 = vadd.f32 %v2473_v60, %v2335_v52  ;;  %v4422_v8 = vpop.f32.mrb[115].mxu0 }
 0x24d   : > { %v5777_v55 = vld [vmem:[#allocation3] sm:$0xf0] }
 0x24e   : > { %v2630_v28 = vsel %vm1079_vm0, %v2628_v37, %v2629_v11  ;;  %v2515_v33 = vadd.f32 %v4076_v25, %v2498_v38  ;;  %v2524_v49 = vmax.f32 %v2514_v62, 0.0  ;;  %v2670_v35 = vrot.slane %v5777_v55, 4  ;;  %v2650_v60 = vld [vmem:[#allocation3] sm:$0xf8]  ;;  %v4086_v62 = vld [vmem:[%s6042_s7 + $0x8] sm:$0xf] }
 0x24f   : > { %2645 = vst.msk [vmem:[#allocation3 + $0x8] sm:$0xff] %vm2644_vm2, %v2630_v28 }
 0x250   : > { %v2525_v34 = vmax.f32 %v2515_v33, 0.0 }
 0x251   : > { %v2478_v50 = vpop.f32.mrb[116].mxu0 }
 0x252   : > { %v2620_v0 = vpack.c.bf16 %v2525_v34, %v2524_v49  ;;  %v2499_v13 = vadd.f32 %v2478_v50, %v2336_v57  ;;  %v4425_v10 = vpop.f32.mrb[117].mxu0 }
 0x253   : > { %v2481_v5 = vpop.f32.mrb[118].mxu0 }
 0x254   : > { %v2631_v20 = vrot.slane %v2620_v0, 4  ;;  %v2516_v1 = vadd.f32 %v4076_v25, %v2499_v13  ;;  %v2500_v48 = vadd.f32 %v2481_v5, %v2337_v44  ;;  %v4426_v41 = vpop.f32.mrb[119].mxu0 }
 0x256   : > { %v2632_v52 = vsel %vm1079_vm0, %v2629_v11, %v2631_v20  ;;  %v2517_v18 = vadd.f32 %v4076_v25, %v2500_v48  ;;  %v5780_v54 = vld [vmem:[#allocation3 + $0x8] sm:$0xff]  ;;  %v2526_v57 = vmax.f32 %v2516_v1, 0.0 }
 0x257   : > { %2646 = vst.msk [vmem:[#allocation3 + $0x10] sm:$0xff] %vm2644_vm2, %v2632_v52  ;;  %v2671_v36 = vrot.slane %v5780_v54, 4  ;;  %v2657_v11 = vsel %vm1058_vm9, %v5780_v54, 0 }
 0x258   : > { %v2527_v2 = vmax.f32 %v2517_v18, 0.0  ;;  %v2769_v8 = vshrl.u32 %v2657_v11, 16  ;;  %v2772_v28 = vshll.u32 %v2657_v11, 16 }
 0x259   : > { %v2486_v17 = vpop.f32.mrb[120].mxu0  ;;  %v2672_v30 = vsel %vm1079_vm0, %v2670_v35, %v2671_v36 }
 0x25a   : > { %v2621_v44 = vpack.c.bf16 %v2527_v2, %v2526_v57  ;;  %v2501_v37 = vadd.f32 %v2486_v17, %v2338_v59  ;;  %v4429_v26 = vpop.f32.mrb[121].mxu0  ;;  %4433 = vmatprep.mubr.msk.bf16.mxu1 %vm2644_vm2, %v2672_v30  ;;  %v2817_v59 = vsel %vm1079_vm0, %v5750_v31, 0  ;;  %v2771_v0 = vrot.slane %v2769_v8, 3 }
 0x25b   : > { %v2489_v29 = vpop.f32.mrb[122].mxu0  ;;  %v2774_v13 = vrot.slane %v2772_v28, 4 }
 0x25c   : > { %v2633_v16 = vrot.slane %v2621_v44, 4  ;;  %v2518_v45 = vadd.f32 %v4076_v25, %v2501_v37  ;;  %v4430_v4 = vpop.f32.mrb[123].mxu0 }
 0x25d   : > { %v2775_v35 = vor.u32 %v2774_v13, %v2771_v0  ;;  %v2887_v4 = vsel %vm1429_vm5, %v5780_v54, 0 }
 0x25e   : > { %v2634_v22 = vsel %vm1079_vm0, %v2631_v20, %v2633_v16  ;;  %v2528_v9 = vmax.f32 %v2518_v45, 0.0  ;;  %v5788_v7 = vld [vmem:[#allocation3 + $0x10] sm:$0xff]  ;;  %v2905_v11 = vshll.u32 %v2887_v4, 16 }
 0x25f   : > { %2647 = vst.msk [vmem:[#allocation3 + $0x18] sm:$0xff] %vm2644_vm2, %v2634_v22  ;;  %v5792_v51 = vrot.slane %v5788_v7, 4  ;;  %v2658_v10 = vsel %vm1059_vm15, %v5788_v7, 0  ;;  %v2886_v22 = vsel %vm1428_vm11, %v5777_v55, 0 }
 0x260   : > { %v2622_v40 = vpack.c.bf16 %v4650_v19, %v2528_v9  ;;  %v2656_v19 = vsel %vm1057_vm4, %v2650_v60, 0  ;;  %v2778_v41 = vshrl.u32 %v2658_v10, 16  ;;  %v2781_v52 = vshll.u32 %v2658_v10, 16 }
 0x261   : > { %v2674_v25 = vsel %vm1079_vm0, %v2671_v36, %v5792_v51  ;;  %v2761_v49 = vshrl.u32 %v2656_v19, 16  ;;  %v2764_v34 = vshll.u32 %v2656_v19, 16  ;;  %v2894_v19 = vshrl.u32 %v2886_v22, 16 }
 0x262   : > { %v2635_v38 = vrot.slane %v2622_v40, 4  ;;  %4434 = vmatmul.mubr.msk.bf16.vlgmr.msra.gmra.mrb[56].mxu1 %vm2644_vm2, %v2674_v25  ;;  %v2780_v44 = vrot.slane %v2778_v41, 3  ;;  %v2783_v37 = vrot.slane %v2781_v52, 4  ;;  %v2902_v25 = vshrl.u32 %v2887_v4, 16 }
 0x263   : > { %4442 = vmatpush3.bf16.msra.mxu1 %v2817_v59  ;;  %v2763_v1 = vrot.slane %v2761_v49, 3  ;;  %v2766_v48 = vrot.slane %v2764_v34, 4  ;;  %v4091_v34 = vld [vmem:[%s6042_s7 + $0xc] sm:$0xf]  ;;  %v2907_v13 = vrot.slane %v2905_v11, 5 }
 0x264   : > { %v2636_v31 = vsel %vm1079_vm0, %v2633_v16, %v2635_v38  ;;  %2649 = vst.msk [vmem:[#allocation3 + $0x28] sm:$0xf] %vm2614_vm13, %v2635_v38  ;;  %4589 = vmatprep.subr.msk.bf16.mxu1 %vm1079_vm0, %v4086_v62  ;;  %v2784_v9 = vor.u32 %v2783_v37, %v2780_v44  ;;  %v2950_v38 = vsel %vm1079_vm0, %v4086_v62, 0  ;;  %v2904_v0 = vrot.slane %v2902_v25, 4 }
 0x265   : > { %2648 = vst.msk [vmem:[#allocation3 + $0x20] sm:$0xff] %vm2644_vm2, %v2636_v31  ;;  %v2767_v17 = vor.u32 %v2766_v48, %v2763_v1  ;;  %v2897_v31 = vshll.u32 %v2886_v22, 16  ;;  %v2888_v62 = vsel %vm6064_vm6, %v5788_v7, 0  ;;  %vm2885_vm13 = vcmp.ne.s16.totalorder %v5484_v56, 0  ;;  %v4096_v56 = vld [vmem:[%s6042_s7 + $0x10] sm:$0xf] }
 0x266   : > { %v5812_v33 = vld [vmem:[#allocation3 + $0x18] sm:$0xff]  ;;  %v2785_v8 = vsel %vm1183_vm14, %v2775_v35, %v2784_v9  ;;  %v2911_v41 = vshrl.u32 %v2888_v62, 16  ;;  %v2914_v52 = vshll.u32 %v2888_v62, 16  ;;  %vm6110_vm6 = vcmp.ne.s16.totalorder %v4970_v12, 0 }
 0x267   : > { %v5815_v50 = vrot.slane %v5812_v33, 4  ;;  %v2659_v20 = vsel %vm1060_vm8, %v5812_v33, 0  ;;  %v2776_v29 = vsel %vm1183_vm14, %v2767_v17, %v2775_v35  ;;  %v2889_v10 = vsel %vm6109_vm3, %v5812_v33, 0 }
 0x268   : > { %v2787_v36 = vshrl.u32 %v2659_v20, 16  ;;  %v2790_v57 = vshll.u32 %v2659_v20, 16  ;;  %v2896_v20 = vrot.slane %v2894_v19, 4  ;;  %v2899_v1 = vrot.slane %v2897_v31, 5 }
 0x269   : > { %v5823_v5 = vsel %vm1079_vm0, %v5792_v51, %v5815_v50  ;;  %v2920_v35 = vshrl.u32 %v2889_v10, 16  ;;  %v3029_v17 = vsel %vm6110_vm6, %v5780_v54, 0  ;;  %v2913_v44 = vrot.slane %v2911_v41, 4  ;;  %vm6111_vm6 = vmmov %vm6109_vm3 }
 0x26a   : > { %4437 = vmatprep.mubr.msk.bf16.mxu1 %vm2644_vm2, %v5823_v5  ;;  %v2789_v16 = vrot.slane %v2787_v36, 3  ;;  %v2792_v45 = vrot.slane %v2790_v57, 4  ;;  %v2923_v36 = vshll.u32 %v2889_v10, 16  ;;  %v2916_v37 = vrot.slane %v2914_v52, 5 }
 0x26b   : > { %v3040_v4 = vshrl.u32 %v3029_v17, 16  ;;  %v3632_v12 = vld [vmem:[#allocation3 + $0x28] sm:$0x1f]  ;;  %v3084_v19 = vsel %vm1079_vm0, %v4091_v34, 0  ;;  %vm6112_vm3 = vcmp.ne.s16.totalorder %v5010_v14, 0  ;;  %v3043_v52 = vshll.u32 %v3029_v17, 16 }
 0x26c   : > { %v2654_v18 = vld [vmem:[#allocation3 + $0x20] sm:$0xf]  ;;  %v2793_v60 = vor.u32 %v2792_v45, %v2789_v16  ;;  %v2925_v16 = vrot.slane %v2923_v36, 5 }
 0x26d   : > { %v2677_v2 = vrot.slane %v2654_v18, 4  ;;  %v2660_v26 = vsel %vm2655_vm7, %v2654_v18, 0  ;;  %v2908_v18 = vor.u32 %v2907_v13, %v2904_v0  ;;  %v2884_v57 = vld [vmem:[#allocation3 + $0x20] sm:$0x1f] }
 0x26e   : > { %v2796_v40 = vshrl.u32 %v2660_v26, 16  ;;  %v2799_v59 = vshll.u32 %v2660_v26, 16  ;;  %v2794_v55 = vsel %vm1183_vm14, %v2784_v9, %v2793_v60  ;;  %v2890_v45 = vsel %vm2885_vm13, %v2884_v57, 0  ;;  %v5869_v22 = vld [vmem:[#allocation3 + $0x20] sm:$0xff] }
 0x26f   : > { %v2678_v30 = vsel %vm1079_vm0, %v5815_v50, %v2677_v2  ;;  %v2900_v2 = vor.u32 %v2899_v1, %v2896_v20  ;;  %v3025_v9 = vld [vmem:[#allocation3] sm:$0x80]  ;;  %v3636_v11 = vsel %vm6111_vm6, %v5869_v22, 0  ;;  %vm6114_vm6 = vcmp.ne.s16.totalorder %v5221_v15, 0 }
 0x270   : > { %4438 = vmatmul.mubr.msk.bf16.gmra.mrb[60].mxu1 %vm2644_vm2, %v2678_v30  ;;  %v2798_v28 = vrot.slane %v2796_v40, 3  ;;  %v2801_v49 = vrot.slane %v2799_v59, 4  ;;  %v2917_v40 = vor.u32 %v2916_v37, %v2913_v44  ;;  %v2929_v59 = vshrl.u32 %v2890_v45, 16 }
 0x271   : > { %4443 = vmatprep.mubr.msk.bf16.mxu1 %vm2644_vm2, %v2776_v29  ;;  %v2909_v26 = vsel %vm1012_vm10, %v2900_v2, %v2908_v18  ;;  %v2922_v29 = vrot.slane %v2920_v35, 4  ;;  %v3028_v31 = vsel %vm1613_vm12, %v3025_v9, 0  ;;  %vm6113_vm12 = vcmp.ne.s16.totalorder %v5038_v61, 0 }
 0x272   : > { %v2802_v48 = vor.u32 %v2801_v49, %v2798_v28  ;;  %v3667_v28 = vshrl.u32 %v3636_v11, 16  ;;  %v3030_v49 = vsel %vm6112_vm3, %v5788_v7, 0  ;;  %v2918_v58 = vsel %vm1012_vm10, %v2908_v18, %v2917_v40 }
 0x273   : > { %v2926_v25 = vor.u32 %v2925_v16, %v2922_v29  ;;  %v2931_v62 = vrot.slane %v2929_v59, 4  ;;  %v3036_v41 = vshrl.u32 %v3028_v31, 16  ;;  %v3048_v57 = vshrl.u32 %v3030_v49, 16 }
 0x274   : > { %v2803_v30 = vsel %vm1183_vm14, %v2793_v60, %v2802_v48  ;;  %v2932_v60 = vshll.u32 %v2890_v45, 16  ;;  %v3031_v48 = vsel %vm6113_vm12, %v5812_v33, 0  ;;  %v3051_v45 = vshll.u32 %v3030_v49, 16 }
 0x275   : > { %v2927_v6 = vsel %vm1012_vm10, %v2917_v40, %v2926_v25  ;;  %v3038_v37 = vrot.slane %v3036_v41, 7  ;;  %vm6115_vm3 = vcmp.ne.s16.totalorder %v5255_v43, 0  ;;  %vm6117_vm12 = vcmp.ne.s16.totalorder %v5378_v21, 0 }
 0x276   : > { %v2934_v10 = vrot.slane %v2932_v60, 5 }
 0x278   : > { %4444 = vmatmul.mubr.msk.bf16.vlgmr.msra.gmra.mrb[56].mxu1 %vm2644_vm2, %v2785_v8  ;;  %v3042_v8 = vrot.slane %v3040_v4, 7  ;;  %v2935_v36 = vor.u32 %v2934_v10, %v2931_v62  ;;  %v3059_v4 = vshll.u32 %v3031_v48, 16  ;;  %v3258_v62 = vsel %vm6117_vm12, %v5869_v22, 0 }
 0x279   : > { %4452 = vmatpush3.bf16.msra.mxu1 %v2950_v38  ;;  %4447 = vmatprep.mubr.msk.bf16.mxu1 %vm2644_vm2, %v2794_v55  ;;  %v3637_v38 = vsel %vm2885_vm13, %v3632_v12, 0  ;;  %v3670_v55 = vshll.u32 %v3636_v11, 16  ;;  %vm3027_vm13 = vcmp.ne.s16.totalorder %v5043_v47, 0  ;;  %v3174_v47 = vsel %vm1079_vm0, %v4096_v56, 0 }
 0x27a   : > { %4590 = vmatprep.subr.msk.bf16.mxu1 %vm1079_vm0, %v4091_v34  ;;  %v3676_v0 = vshrl.u32 %v3637_v38, 16  ;;  %v3679_v13 = vshll.u32 %v3637_v38, 16  ;;  %v3669_v34 = vrot.slane %v3667_v28, 4  ;;  %v3045_v2 = vor.u32 %v3043_v52, %v3042_v8 }
 0x27b   : > { %v3672_v20 = vrot.slane %v3670_v55, 5  ;;  %v2936_v61 = vsel %vm1012_vm10, %v2926_v25, %v2935_v36  ;;  %v3032_v16 = vsel %vm3027_vm13, %v5869_v22, 0  ;;  %v4101_v25 = vld [vmem:[%s6042_s7 + $0x14] sm:$0xf]  ;;  %v3256_v28 = vsel %vm6115_vm3, %v5788_v7, 0 }
 0x27c   : > { %v3678_v1 = vrot.slane %v3676_v0, 4  ;;  %v3681_v14 = vrot.slane %v3679_v13, 5  ;;  %v3046_v17 = vsel %vm1627_vm1, %v3038_v37, %v3045_v2  ;;  %v3064_v9 = vshrl.u32 %v3032_v16, 16  ;;  %v4106_v0 = vld [vmem:[%s6042_s7 + $0x18] sm:$0xf] }
 0x27d   : > { %v5893_v18 = vor.u32 %v3672_v20, %v3669_v34  ;;  %v3067_v38 = vshll.u32 %v3032_v16, 16  ;;  %v3311_v49 = vsel %vm1079_vm0, %v4101_v25, 0  ;;  %v3270_v13 = vshll.u32 %v3256_v28, 16  ;;  %v3386_v20 = vld [vmem:[#allocation3 + $0x8] sm:$0xf8] }
 0x27e   : > { %v3682_v35 = vor.u32 %v3681_v14, %v3678_v1  ;;  %v3066_v60 = vrot.slane %v3064_v9, 7  ;;  %vm6118_vm13 = vsmask.f32 7424  ;;  %v3274_v14 = vshrl.u32 %v3256_v28, 16 }
 0x27f   : > { %v3388_v21 = vsel %vm1057_vm4, %v3386_v20, 0  ;;  %v3452_v2 = vsel %vm1079_vm0, %v4106_v0, 0  ;;  %v3390_v16 = vsel %vm1059_vm15, %v5812_v33, 0 }
 0x280   : > { %4448 = vmatmul.mubr.msk.bf16.gmra.mrb[60].mxu1 %vm2644_vm2, %v2803_v30  ;;  %v3056_v30 = vshrl.u32 %v3031_v48, 16  ;;  %v5897_v44 = vsel %vm1012_vm10, %v5893_v18, %v3682_v35  ;;  %v3253_v48 = vld [vmem:[#allocation3 + $0x28] sm:$0x1]  ;;  %v3399_v23 = vshll.u32 %v3388_v21, 16 }
 0x281   : > { %4453 = vmatprep.mubr.msk.bf16.mxu1 %vm2644_vm2, %v2909_v26  ;;  %v3050_v26 = vrot.slane %v3048_v57, 7 }
 0x282   : > { %v3058_v29 = vrot.slane %v3056_v30, 7 }
 0x283   : > { %v3053_v12 = vor.u32 %v3051_v45, %v3050_v26  ;;  %v3290_v45 = vshrl.u32 %v3258_v62, 16 }
 0x284   : > { %v3061_v40 = vor.u32 %v3059_v4, %v3058_v29 }
 0x285   : > { %v3054_v59 = vsel %vm1627_vm1, %v3042_v8, %v3053_v12  ;;  %v3255_v8 = vsel %vm6114_vm6, %v5780_v54, 0  ;;  %vm3254_vm6 = vcmp.ne.s16.totalorder %v5324_v42, 0  ;;  %v4111_v42 = vld [vmem:[%s6042_s7 + $0x1c] sm:$0xf]  ;;  %v3391_v12 = vsel %vm1060_vm8, %v5869_v22, 0 }
 0x286   : > { %v3062_v11 = vsel %vm1627_vm1, %v3050_v26, %v3061_v40  ;;  %v3265_v55 = vshll.u32 %v3255_v8, 16  ;;  %v3259_v37 = vsel %vm3254_vm6, %v3253_v48, 0  ;;  %v3401_v40 = vrot.slane %v3399_v23, 4 }
 0x287   : > { %v3294_v4 = vshll.u32 %v3259_v37, 16  ;;  %v3425_v27 = vshll.u32 %v3391_v12, 16 }
 0x288   : > { %4454 = vmatmul.mubr.msk.bf16.vlgmr.msra.gmra.mrb[56].mxu1 %vm2644_vm2, %v2918_v58  ;;  %v3267_v15 = vrot.slane %v3265_v55, 1  ;;  %v3272_v58 = vrot.slane %v3270_v13, 1 }
 0x289   : > { %4462 = vmatpush3.bf16.msra.mxu1 %v3084_v19  ;;  %4457 = vmatprep.mubr.msk.bf16.mxu1 %vm2644_vm2, %v2927_v6  ;;  %v3069_v19 = vor.u32 %v3067_v38, %v3066_v60  ;;  %v3286_v6 = vshll.u32 %v3258_v62, 16  ;;  %v3416_v60 = vshll.u32 %v3390_v16, 16  ;;  %v3296_v38 = vrot.slane %v3294_v4, 1 }
 0x28a   : > { %4591 = vmatprep.subr.msk.bf16.mxu1 %vm1079_vm0, %v4096_v56  ;;  %v3276_v57 = vor.u32 %v3274_v14, %v3272_v58  ;;  %v3557_v62 = vsel %vm1079_vm0, %v4111_v42, 0 }
 0x28b   : > { %v3070_v31 = vsel %vm1627_vm1, %v3058_v29, %v3069_v19  ;;  %vm6116_vm1 = vcmp.ne.s16.totalorder %v5343_v63, 0  ;;  %v3389_v63 = vsel %vm1058_vm9, %v5788_v7, 0  ;;  %v3288_v52 = vrot.slane %v3286_v6, 1  ;;  %vm6119_vm9 = vmmov %vm6118_vm13  ;;  %v3387_v19 = vld [vmem:[#allocation3 + $0x28] sm:$0xf] }
 0x28c   : > { %v3257_v43 = vsel %vm6116_vm1, %v5812_v33, 0  ;;  %v3404_v35 = vshrl.u32 %v3389_v63, 16  ;;  %v3407_v36 = vshll.u32 %v3389_v63, 16  ;;  %vm6120_vm4 = vmmov %vm6119_vm9  ;;  %v3392_v13 = vsel %vm2655_vm7, %v3387_v19, 0  ;;  %v4116_v6 = vld [vmem:[%s6042_s7 + $0x20] sm:$0xf] }
 0x28d   : > { %v3278_v56 = vshll.u32 %v3257_v43, 16  ;;  %v3282_v41 = vshrl.u32 %v3257_v43, 16  ;;  %vm6121_vm15 = vmmov %vm6120_vm4  ;;  %v3431_v43 = vshrl.u32 %v3392_v13, 16  ;;  %v3527_v63 = vld [vmem:[#allocation3 + $0x8] sm:$0xf0] }
 0x28e   : > { %v3409_v29 = vrot.slane %v3407_v36, 4 }
 0x28f   : > { %v3280_v1 = vrot.slane %v3278_v56, 1  ;;  %v3433_v56 = vrot.slane %v3431_v43, 3 }
 0x290   : > { %4458 = vmatmul.mubr.msk.bf16.gmra.mrb[60].mxu1 %vm2644_vm2, %v2936_v61  ;;  %v3396_v61 = vshrl.u32 %v3388_v21, 16  ;;  %v3634_v21 = vsel %vm1429_vm5, %v5788_v7, 0 }
 0x291   : > { %4463 = vmatprep.mubr.msk.bf16.mxu1 %vm2644_vm2, %v3046_v17  ;;  %v3284_v30 = vor.u32 %v3282_v41, %v3280_v1  ;;  %v3281_v26 = vsel %vm6119_vm9, %v3276_v57, %v3280_v1  ;;  %v3406_v17 = vrot.slane %v3404_v35, 3  ;;  %v3535_v1 = vrot.slane %v3527_v63, 4 }
 0x292   : > { %v3398_v9 = vrot.slane %v3396_v61, 3  ;;  %v3633_v41 = vsel %vm1428_vm11, %v3527_v63, 0  ;;  %v3649_v35 = vshrl.u32 %v3634_v21, 16  ;;  %v3652_v36 = vshll.u32 %v3634_v21, 16 }
 0x293   : > { %v3289_v3 = vsel %vm6120_vm4, %v3284_v30, %v3288_v52  ;;  %v3537_v48 = vsel %vm1079_vm0, %v3535_v1, %v5792_v51  ;;  %v3697_v57 = vsel %vm1079_vm0, %v4116_v6, 0  ;;  %v3644_v30 = vshll.u32 %v3633_v41, 16 }
 0x294   : > { %v3651_v37 = vrot.slane %v3649_v35, 4  ;;  %v3654_v53 = vrot.slane %v3652_v36, 5  ;;  %v3542_v61 = vrot.slane %v3387_v19, 4 }
 0x298   : > { %4464 = vmatmul.mubr.msk.bf16.vlgmr.msra.gmra.mrb[56].mxu1 %vm2644_vm2, %v3054_v59  ;;  %v3413_v59 = vshrl.u32 %v3390_v16, 16 }
 0x299   : > { %4472 = vmatpush3.bf16.msra.mxu1 %v3174_v47  ;;  %4467 = vmatprep.mubr.msk.bf16.mxu1 %vm2644_vm2, %v3062_v11  ;;  %v3292_v47 = vor.u32 %v3290_v45, %v3288_v52  ;;  %v3422_v11 = vshrl.u32 %v3391_v12, 16  ;;  %v3540_v52 = vrot.slane %v5869_v22, 4  ;;  %v4121_v45 = vld [vmem:[%s6043_s8] ss:$0 sm:$0xff] }
 0x29a   : > { %4592 = vmatprep.subr.msk.bf16.mxu1 %vm1079_vm0, %v4101_v25  ;;  %v3410_v25 = vor.u32 %v3409_v29, %v3406_v17  ;;  %v3415_v28 = vrot.slane %v3413_v59, 3 }
 0x29b   : > { %v3424_v55 = vrot.slane %v3422_v11, 3  ;;  %v3541_v51 = vsel %vm1079_vm0, %v5815_v50, %v3540_v52 }
 0x2a0   : > { %4468 = vmatmul.mubr.msk.bf16.gmra.mrb[60].mxu1 %vm2644_vm2, %v3070_v31  ;;  %v3402_v31 = vor.u32 %v3401_v40, %v3398_v9 }
 0x2a1   : > { %4473 = vmatprep.mubr.msk.bf16.mxu1 %vm2644_vm2, %v5780_v54  ;;  %v3263_v54 = vshrl.u32 %v3255_v8, 16  ;;  %v3297_v8 = vsel %vm6121_vm15, %v3292_v47, %v3296_v38 }
 0x2a2   : > { %v3411_v24 = vsel %vm1183_vm14, %v3402_v31, %v3410_v25 }
 0x2a3   : > { %v3268_v10 = vor.u32 %v3267_v15, %v3263_v54  ;;  %v3434_v54 = vshll.u32 %v3392_v13, 16 }
 0x2a5   : > { %v3273_v34 = vsel %vm6118_vm13, %v3268_v10, %v3272_v58 }
 0x2a8   : > { %4474 = vmatmul.mubr.msk.bf16.vlgmr.msra.gmra.mrb[56].mxu1 %vm2644_vm2, %v5788_v7 }
 0x2a9   : > { %4482 = vmatpush3.bf16.msra.mxu1 %v3311_v49  ;;  %4477 = vmatprep.mubr.msk.bf16.mxu1 %vm2644_vm2, %v5812_v33  ;;  %v3418_v49 = vrot.slane %v3416_v60, 4 }
 0x2aa   : > { %4593 = vmatprep.subr.msk.bf16.mxu1 %vm1079_vm0, %v4106_v0  ;;  %v3427_v0 = vrot.slane %v3425_v27, 4 }
 0x2ab   : > { %v3419_v15 = vor.u32 %v3418_v49, %v3415_v28 }
 0x2ac   : > { %v3428_v58 = vor.u32 %v3427_v0, %v3424_v55 }
 0x2ad   : > { %v3420_v10 = vsel %vm1183_vm14, %v3410_v25, %v3419_v15 }
 0x2ae   : > { %v3429_v32 = vsel %vm1183_vm14, %v3419_v15, %v3428_v58 }
 0x2b0   : > { %4478 = vmatmul.mubr.msk.bf16.gmra.mrb[60].mxu1 %vm2644_vm2, %v5869_v22  ;;  %v3646_v22 = vrot.slane %v3644_v30, 5 }
 0x2b1   : > { %4483 = vmatprep.mubr.msk.bf16.mxu1 %vm2644_vm2, %v3273_v34  ;;  %v3436_v34 = vrot.slane %v3434_v54, 4 }
 0x2b3   : > { %v3437_v20 = vor.u32 %v3436_v34, %v3433_v56 }
 0x2b5   : > { %v3438_v14 = vsel %vm1183_vm14, %v3428_v58, %v3437_v20  ;;  %vm6122_vm14 = vcmp.ne.s16.totalorder %v5479_v39, 0 }
 0x2b6   : > { %v3635_v46 = vsel %vm6122_vm14, %v5812_v33, 0 }
 0x2b7   : > { %v3658_v23 = vshrl.u32 %v3635_v46, 16 }
 0x2b8   : > { %4484 = vmatmul.mubr.msk.bf16.vlgmr.msra.gmra.mrb[56].mxu1 %vm2644_vm2, %v3281_v26  ;;  %v3661_v26 = vshll.u32 %v3635_v46, 16 }
 0x2b9   : > { %4492 = vmatpush3.bf16.msra.mxu1 %v3452_v2  ;;  %4487 = vmatprep.mubr.msk.bf16.mxu1 %vm2644_vm2, %v3289_v3  ;;  %v3641_v2 = vshrl.u32 %v3633_v41, 16  ;;  %v3660_v50 = vrot.slane %v3658_v23, 4 }
 0x2ba   : > { %4594 = vmatprep.subr.msk.bf16.mxu1 %vm1079_vm0, %v4111_v42  ;;  %v3655_v42 = vor.u32 %v3654_v53, %v3651_v37  ;;  %v3663_v17 = vrot.slane %v3661_v26, 5 }
 0x2bb   : > { %v3643_v7 = vrot.slane %v3641_v2, 4 }
 0x2bc   : > { %v3664_v33 = vor.u32 %v3663_v17, %v3660_v50 }
 0x2bd   : > { %v3647_v3 = vor.u32 %v3646_v22, %v3643_v7 }
 0x2be   : > { %v3665_v29 = vsel %vm1012_vm10, %v3655_v42, %v3664_v33  ;;  %v3674_v16 = vsel %vm1012_vm10, %v3664_v33, %v5893_v18 }
 0x2bf   : > { %v3656_v39 = vsel %vm1012_vm10, %v3647_v3, %v3655_v42 }
 0x2c0   : > { %4488 = vmatmul.mubr.msk.bf16.gmra.mrb[60].mxu1 %vm2644_vm2, %v3297_v8 }
 0x2c1   : > { %4493 = vmatprep.mubr.msk.bf16.mxu1 %vm2644_vm2, %v3411_v24 }
 0x2c8   : > { %4494 = vmatmul.mubr.msk.bf16.vlgmr.msra.gmra.mrb[56].mxu1 %vm2644_vm2, %v3420_v10 }
 0x2c9   : > { %4502 = vmatpush3.bf16.msra.mxu1 %v3557_v62  ;;  %4497 = vmatprep.mubr.msk.bf16.mxu1 %vm2644_vm2, %v3429_v32 }
 0x2ca   : > { %4595 = vmatprep.subr.msk.bf16.mxu1 %vm1079_vm0, %v4116_v6 }
 0x2d0   : > { %4498 = vmatmul.mubr.msk.bf16.gmra.mrb[60].mxu1 %vm2644_vm2, %v3438_v14 }
 0x2d1   : > { %4503 = vmatprep.mubr.msk.bf16.mxu1 %vm2644_vm2, %v3537_v48 }
 0x2d8   : > { %4504 = vmatmul.mubr.msk.bf16.vlgmr.msra.gmra.mrb[56].mxu1 %vm2644_vm2, %v5823_v5  ;;  %v3543_v5 = vsel %vm1079_vm0, %v3540_v52, %v3542_v61 }
 0x2d9   : > { %4512 = vmatpush3.bf16.msra.mxu1 %v3697_v57  ;;  %4507 = vmatprep.mubr.msk.bf16.mxu1 %vm2644_vm2, %v3541_v51 }
 0x2e0   : > { %4508 = vmatmul.mubr.msk.bf16.gmra.mrb[60].mxu1 %vm2644_vm2, %v3543_v5 }
 0x2e1   : > { %4513 = vmatprep.mubr.msk.bf16.mxu1 %vm2644_vm2, %v3656_v39 }
 0x2e8   : > { %4514 = vmatmul.mubr.msk.bf16.vlgmr.msra.gmra.mrb[56].mxu1 %vm2644_vm2, %v3665_v29 }
 0x2e9   : > { %4517 = vmatprep.mubr.msk.bf16.mxu1 %vm2644_vm2, %v3674_v16 }
 0x2f0   : > { %4518 = vmatmul.mubr.msk.bf16.gmra.mrb[60].mxu1 %vm2644_vm2, %v5897_v44 }
 0x3bb   : > { %v4515_v4 = vpop.f32.mrb[56].mxu1 }
 0x3bc   : > { %v3781_v12 = vadd.f32 %v4515_v4, %v4121_v45  ;;  %v3733_v9 = vpop.f32.mrb[57].mxu1 }
 0x3bd   : > { %v3779_v40 = vadd.f32 %v4121_v45, %v3733_v9  ;;  %v4516_v47 = vpop.f32.mrb[58].mxu1 }
 0x3be   : > { %v3789_v18 = vmax.f32 %v3781_v12, 0.0  ;;  %v3782_v59 = vadd.f32 %v4516_v47, %v4121_v45  ;;  %v3736_v60 = vpop.f32.mrb[59].mxu1 }
 0x3bf   : > { %v3787_v25 = vmax.f32 %v3779_v40, 0.0  ;;  %v3780_v11 = vadd.f32 %v4121_v45, %v3736_v60 }
 0x3c0   : > { %3797 = vst.msk [vmem:[%s621_s16 + $0x10] sm:$0xff] %vm2644_vm2, %v3789_v18  ;;  %v3790_v44 = vmax.f32 %v3782_v59, 0.0 }
 0x3c1   : > { %3795 = vst.msk [vmem:[%s621_s16] sm:$0xff] %vm2644_vm2, %v3787_v25  ;;  %v3788_v27 = vmax.f32 %v3780_v11, 0.0 }
 0x3c2   : > { %3798 = vst.msk [vmem:[%s621_s16 + $0x18] sm:$0xff] %vm2644_vm2, %v3790_v44 }
 0x3c3   : > { %3796 = vst.msk [vmem:[%s621_s16 + $0x8] sm:$0xff] %vm2644_vm2, %v3788_v27  ;;  %v4519_v38 = vpop.f32.mrb[60].mxu1 }
 0x3c4   : > { %v3785_v19 = vadd.f32 %v4519_v38, %v4121_v45  ;;  %v3749_v31 = vpop.f32.mrb[61].mxu1 }
 0x3c5   : > { %v3783_v8 = vadd.f32 %v4121_v45, %v3749_v31  ;;  %v4520_v28 = vpop.f32.mrb[62].mxu1 }
 0x3c6   : > { %v3793_v49 = vmax.f32 %v3785_v19, 0.0  ;;  %v3786_v24 = vadd.f32 %v4520_v28, %v4121_v45  ;;  %v3752_v55 = vpop.f32.mrb[63].mxu1 }
 0x3c7   : > { %v3791_v0 = vmax.f32 %v3783_v8, 0.0  ;;  %v3784_v13 = vadd.f32 %v4121_v45, %v3752_v55 }
 0x3c8   : > { %3801 = vst.msk [vmem:[%s621_s16 + $0x30] sm:$0xff] %vm2644_vm2, %v3793_v49  ;;  %v3794_v15 = vmax.f32 %v3786_v24, 0.0 }
 0x3c9   : > { %3799 = vst.msk [vmem:[%s621_s16 + $0x20] sm:$0xff] %vm2644_vm2, %v3791_v0  ;;  %v3792_v43 = vmax.f32 %v3784_v13, 0.0 }
 0x3ca   : > { %3802 = vst.msk [vmem:[%s621_s16 + $0x38] sm:$0xff] %vm2644_vm2, %v3794_v15 }
 0x3cb   : > { %3800 = vst.msk [vmem:[%s621_s16 + $0x28] sm:$0xff] %vm2644_vm2, %v3792_v43 }
 0x3cc PF: > { %s19_s4 = sadd.s32 1, %s4646_s4   ;;  %s6123_s28 = smov %s4642_s3 }
 0x3cd   : > { %p16_p5 = scmp.ge.s32.totalorder %s19_s4, 4   ;;  %s6124_s3 = smov %s6126_s29 }
 0x3cf   :  { %18 = sbr.rel (!%p16_p5) target bundleno = 2 (0x2), region = 119 }

</bundles_post_ra>
